<compile_context>
chip_gen: v7x
topology: tpu7x:2x2x1
jax: 0.10.0
libtpu: 0.0.40
codegen_flags: <defaults>
</compile_context>

<pallas_src>
from functools import partial

import jax
import jax.numpy as jnp
from jax.experimental import pallas as pl
from jax.experimental.pallas import tpu as pltpu

LN_EPS = 1e-5  # torch.nn.LayerNorm default


def _abmil_kernel(x_ref, cls_ref, ln_w_ref, ln_b_ref,
                  wq_t_ref, wk_t_ref, wv_t_ref,
                  bq_ref, bk_ref, bv_ref,
                  wo_t_ref, bo_ref,
                  hmask_ref, hmask_t_ref,
                  o_ref, *, num_heads, compute_dtype):
    tb, n, d = x_ref.shape
    dh = d // num_heads
    scale = 1.0 / (dh ** 0.5)
    cdt = compute_dtype

    ln_w = ln_w_ref[...]                       # (1, D) f32
    ln_b = ln_b_ref[...]

    def layer_norm(t):                         # t: (M, D) f32
        mean = jnp.mean(t, axis=-1, keepdims=True)
        c = t - mean
        var = jnp.mean(c * c, axis=-1, keepdims=True)
        return c * jax.lax.rsqrt(var + LN_EPS) * ln_w + ln_b

    # ---- cls-token row (shared by every bag) -> computed once per grid step ----
    z_cls = layer_norm(cls_ref[...].astype(jnp.float32)).astype(cdt)          # (1, D)
    q0    = jnp.dot(z_cls, wq_t_ref[...], preferred_element_type=jnp.float32) + bq_ref[...]
    k_cls = jnp.dot(z_cls, wk_t_ref[...], preferred_element_type=jnp.float32) + bk_ref[...]
    v_cls = jnp.dot(z_cls, wv_t_ref[...], preferred_element_type=jnp.float32) + bv_ref[...]

    # ---- instance rows of all TB bags as one (TB*N, D) slab ----
    xf  = x_ref[...].astype(jnp.float32).reshape(tb * n, d)
    z_x = layer_norm(xf).astype(cdt)
    k_x = jnp.dot(z_x, wk_t_ref[...], preferred_element_type=jnp.float32) + bk_ref[...]   # (TB*N, D)
    v_x = jnp.dot(z_x, wv_t_ref[...], preferred_element_type=jnp.float32) + bv_ref[...]   # (TB*N, D)

    # ---- per-head scores via one-hot head mask (no lane slicing of D) ----
    # scores[s, h] = sum_{d in head h} q0[d] * k[s, d]
    sc_x   = jnp.dot(q0 * k_x,   hmask_ref[...], preferred_element_type=jnp.float32) * scale   # (TB*N, H)
    sc_cls = jnp.dot(q0 * k_cls, hmask_ref[...], preferred_element_type=jnp.float32) * scale   # (1, H)
    sc_x = sc_x.reshape(tb, n, num_heads)                                                       # (TB, N, H)

    # ---- softmax over the N+1 positions (cls + instances), per bag, per head ----
    m = jnp.maximum(jnp.max(sc_x, axis=1), sc_cls)                      # (TB, H)
    p_x   = jnp.exp(sc_x - m[:, None, :])                               # (TB, N, H)
    p_cls = jnp.exp(sc_cls - m)                                         # (TB, H)
    inv = pl.reciprocal(jnp.sum(p_x, axis=1) + p_cls, approx=True)      # (TB, H)
    p_x   = p_x * inv[:, None, :]
    p_cls = p_cls * inv

    # ---- attention output: expand head probs back to lane width D, reduce over keys ----
    p_x_full = jnp.dot(p_x.reshape(tb * n, num_heads), hmask_t_ref[...],
                       preferred_element_type=jnp.float32)              # (TB*N, D)
    p_c_full = jnp.dot(p_cls, hmask_t_ref[...],
                       preferred_element_type=jnp.float32)              # (TB, D)
    attn = jnp.sum((p_x_full * v_x).reshape(tb, n, d), axis=1) + p_c_full * v_cls   # (TB, D)

    # ---- output projection ----
    out = jnp.dot(attn.astype(cdt), wo_t_ref[...], preferred_element_type=jnp.float32) + bo_ref[...]
    # TODO(synk): nn.Dropout / attention dropout are identity in eval mode; no RNG applied.
    o_ref[0] = out.astype(o_ref.dtype)                                  # (TB, D)


def abmil_forward(x, params, num_heads, *, batch_block=8, compute_dtype=jnp.bfloat16):
    B, N, D = x.shape
    assert D % num_heads == 0, "input_dim must be divisible by num_heads"
    dh = D // num_heads

    # largest batch tile that divides B (keeps the wrapper pad-free)
    tb = max(1, min(batch_block, B))
    while B % tb:
        tb -= 1
    nblk = B // tb

    cdt = compute_dtype
    row = lambda a: a.astype(jnp.float32).reshape(1, -1)

    # one-time weight prep, hoisted out of the kernel: split, transpose, cast
    wq, wk, wv = jnp.split(params["in_proj_weight"], 3, axis=0)
    bq, bk, bv = jnp.split(params["in_proj_bias"], 3, axis=0)
    wq_t, wk_t, wv_t = (w.T.astype(cdt) for w in (wq, wk, wv))
    wo_t = params["out_w"].T.astype(cdt)

    # one-hot head-assignment masks: hmask[d, h] = 1 iff feature d belongs to head h
    head_of = jnp.arange(D) // dh
    hmask = (head_of[:, None] == jnp.arange(num_heads)[None, :]).astype(jnp.float32)  # (D, H)
    hmask_t = hmask.T                                                                  # (H, D)

    cls = params["cls_token"].reshape(1, D).astype(x.dtype)

    def bcast(shape):
        return pl.BlockSpec(shape, lambda i: (0,) * len(shape))

    out = pl.pallas_call(
        partial(_abmil_kernel, num_heads=num_heads, compute_dtype=cdt),
        out_shape=jax.ShapeDtypeStruct((nblk, tb, D), x.dtype),
        grid=(nblk,),
        in_specs=[
            pl.BlockSpec((tb, N, D), lambda i: (i, 0, 0)),     # x: TB bags per step
            bcast((1, D)),                                     # cls token
            bcast((1, D)), bcast((1, D)),                      # ln_w, ln_b
            bcast((D, D)), bcast((D, D)), bcast((D, D)),       # Wq^T, Wk^T, Wv^T
            bcast((1, D)), bcast((1, D)), bcast((1, D)),       # bq, bk, bv
            bcast((D, D)), bcast((1, D)),                      # Wo^T, bo
            bcast((D, num_heads)), bcast((num_heads, D)),      # head masks
        ],
        out_specs=pl.BlockSpec((1, tb, D), lambda i: (i, 0, 0)),
        compiler_params=pltpu.CompilerParams(
            dimension_semantics=("parallel",),
            vmem_limit_bytes=64 * 1024 * 1024,
        ),
    )(x, cls,
      row(params["ln_w"]), row(params["ln_b"]),
      wq_t, wk_t, wv_t,
      row(bq), row(bk), row(bv),
      wo_t, row(params["out_b"]),
      hmask, hmask_t)

    # TODO(synk): for very large bags (S*D tiles that do not fit VMEM, esp. v7x 64 MiB),
    # add a KV grid axis with an online-softmax accumulator instead of keeping the
    # whole bag resident per grid step.
    return out.reshape(B, D)


def abmil_reference(x, params, num_heads, compute_dtype=jnp.float32):
    """Pure-JAX mirror of the torch module (eval mode). compute_dtype controls
    the precision of the matmul inputs (float32 == exact torch semantics)."""
    B, N, D = x.shape
    dh = D // num_heads
    cdt = compute_dtype
    cls = jnp.broadcast_to(params["cls_token"].reshape(1, 1, D), (B, 1, D))
    y = jnp.concatenate([cls, x], axis=1).astype(jnp.float32)           # (B, S, D)
    mean = jnp.mean(y, axis=-1, keepdims=True)
    var = jnp.mean((y - mean) ** 2, axis=-1, keepdims=True)
    z = (y - mean) / jnp.sqrt(var + LN_EPS) * params["ln_w"] + params["ln_b"]
    wq, wk, wv = jnp.split(params["in_proj_weight"], 3, axis=0)
    bq, bk, bv = jnp.split(params["in_proj_bias"], 3, axis=0)
    zc = z.astype(cdt)
    proj = lambda w, b: jnp.einsum("bsd,ed->bse", zc, w.astype(cdt),
                                   preferred_element_type=jnp.float32) + b
    q, k, v = proj(wq, bq), proj(wk, bk), proj(wv, bv)                  # (B, S, D)
    qh = q.reshape(B, -1, num_heads, dh)
    kh = k.reshape(B, -1, num_heads, dh)
    vh = v.reshape(B, -1, num_heads, dh)
    s = jnp.einsum("bqhd,bkhd->bhqk", qh, kh) / jnp.sqrt(dh)
    p = jax.nn.softmax(s, axis=-1)
    o = jnp.einsum("bhqk,bkhd->bqhd", p, vh).reshape(B, -1, D)
    out = jnp.einsum("bsd,ed->bse", o.astype(cdt), params["out_w"].astype(cdt),
                     preferred_element_type=jnp.float32) + params["out_b"]
    return out[:, 0, :]


def init_params(key, input_dim):
    D = input_dim
    ks = jax.random.split(key, 5)
    return {
        "cls_token": jax.random.normal(ks[0], (1, 1, D), jnp.float32),        # torch.randn
        "ln_w": jnp.ones((D,), jnp.float32),                                   # LayerNorm defaults
        "ln_b": jnp.zeros((D,), jnp.float32),
        "in_proj_weight": 0.1 * jax.random.normal(ks[1], (3 * D, D), jnp.float32),
        "in_proj_bias": 0.1 * jax.random.normal(ks[2], (3 * D,), jnp.float32),
        "out_w": 0.1 * jax.random.normal(ks[3], (D, D), jnp.float32),
        "out_b": 0.1 * jax.random.normal(ks[4], (D,), jnp.float32),
    }


if __name__ == "__main__":
    B, N, D, H = 4, 8, 32, 4          # bags, instances per bag, input_dim, num_heads
    key = jax.random.PRNGKey(0)
    kx, kp = jax.random.split(key)
    x = jax.random.normal(kx, (B, N, D), jnp.float32)
    params = init_params(kp, D)

    # bf16-MXU production path; batch_block=2 -> 2 grid steps (exercises the pipeline)
    out_bf16 = jax.block_until_ready(
        abmil_forward(x, params, H, batch_block=2, compute_dtype=jnp.bfloat16))
    # f32 path (strict check of the exact torch-eval semantics)
    out_f32 = jax.block_until_ready(
        abmil_forward(x, params, H, compute_dtype=jnp.float32))

    ref_f32 = abmil_reference(x, params, H, compute_dtype=jnp.float32)
    ref_bf16 = abmil_reference(x, params, H, compute_dtype=jnp.bfloat16)

    assert out_bf16.shape == (B, D) and out_f32.shape == (B, D)

    err = float(jnp.max(jnp.abs(out_f32 - ref_f32)))
    assert jnp.allclose(out_f32, ref_f32, atol=1e-2, rtol=1e-2), f"f32 path max abs err {err}"
    err = float(jnp.max(jnp.abs(out_bf16 - ref_bf16)))
    assert jnp.allclose(out_bf16, ref_bf16, atol=1e-2, rtol=1e-2), f"bf16 path max abs err {err}"
    err = float(jnp.max(jnp.abs(out_bf16 - ref_f32)))
    assert jnp.allclose(out_bf16, ref_f32, atol=5e-2, rtol=5e-2), f"bf16 vs f32 max abs err {err}"
    print("KERNEL_OK")
</pallas_src>

<mosaic_0001>
module attributes {stable_mosaic.version = 11 : i64} {
  func.func @_abmil_kernel(%arg0: i32, %arg1: memref<2x8x32xf32, #tpu.memory_space<vmem>>, %arg2: memref<1x32xf32, #tpu.memory_space<vmem>>, %arg3: memref<1x32xf32, #tpu.memory_space<vmem>>, %arg4: memref<1x32xf32, #tpu.memory_space<vmem>>, %arg5: memref<32x32xbf16, #tpu.memory_space<vmem>>, %arg6: memref<32x32xbf16, #tpu.memory_space<vmem>>, %arg7: memref<32x32xbf16, #tpu.memory_space<vmem>>, %arg8: memref<1x32xf32, #tpu.memory_space<vmem>>, %arg9: memref<1x32xf32, #tpu.memory_space<vmem>>, %arg10: memref<1x32xf32, #tpu.memory_space<vmem>>, %arg11: memref<32x32xbf16, #tpu.memory_space<vmem>>, %arg12: memref<1x32xf32, #tpu.memory_space<vmem>>, %arg13: memref<32x4xf32, #tpu.memory_space<vmem>>, %arg14: memref<4x32xf32, #tpu.memory_space<vmem>>, %arg15: memref<1x2x32xf32, #tpu.memory_space<vmem>>) attributes {dimension_semantics = [#tpu.dimension_semantics<parallel>], iteration_bounds = array<i64: 2>, scalar_prefetch = 0 : i64, scratch_operands = 0 : i64, tpu.core_type = #tpu.core_type<tc>, window_params = [{transform_indices = @transform_0, window_bounds = array<i64: 2, 8, 32>}, {pipeline_mode = #tpu.pipeline_mode<synchronous>, transform_indices = @transform_1, window_bounds = array<i64: 1, 32>}, {pipeline_mode = #tpu.pipeline_mode<synchronous>, transform_indices = @transform_2, window_bounds = array<i64: 1, 32>}, {pipeline_mode = #tpu.pipeline_mode<synchronous>, transform_indices = @transform_3, window_bounds = array<i64: 1, 32>}, {pipeline_mode = #tpu.pipeline_mode<synchronous>, transform_indices = @transform_4, window_bounds = array<i64: 32, 32>}, {pipeline_mode = #tpu.pipeline_mode<synchronous>, transform_indices = @transform_5, window_bounds = array<i64: 32, 32>}, {pipeline_mode = #tpu.pipeline_mode<synchronous>, transform_indices = @transform_6, window_bounds = array<i64: 32, 32>}, {pipeline_mode = #tpu.pipeline_mode<synchronous>, transform_indices = @transform_7, window_bounds = array<i64: 1, 32>}, {pipeline_mode = #tpu.pipeline_mode<synchronous>, transform_indices = @transform_8, window_bounds = array<i64: 1, 32>}, {pipeline_mode = #tpu.pipeline_mode<synchronous>, transform_indices = @transform_9, window_bounds = array<i64: 1, 32>}, {pipeline_mode = #tpu.pipeline_mode<synchronous>, transform_indices = @transform_10, window_bounds = array<i64: 32, 32>}, {pipeline_mode = #tpu.pipeline_mode<synchronous>, transform_indices = @transform_11, window_bounds = array<i64: 1, 32>}, {pipeline_mode = #tpu.pipeline_mode<synchronous>, transform_indices = @transform_12, window_bounds = array<i64: 32, 4>}, {pipeline_mode = #tpu.pipeline_mode<synchronous>, transform_indices = @transform_13, window_bounds = array<i64: 4, 32>}, {transform_indices = @transform_14, window_bounds = array<i64: 1, 2, 32>}]} {
    %c0 = arith.constant 0 : index
    %c0_0 = arith.constant 0 : index
    %0 = vector.load %arg3[%c0, %c0_0] : memref<1x32xf32, #tpu.memory_space<vmem>>, vector<1x32xf32>
    %c0_1 = arith.constant 0 : index
    %c0_2 = arith.constant 0 : index
    %1 = vector.load %arg4[%c0_1, %c0_2] : memref<1x32xf32, #tpu.memory_space<vmem>>, vector<1x32xf32>
    %c0_3 = arith.constant 0 : index
    %c0_4 = arith.constant 0 : index
    %2 = vector.load %arg2[%c0_3, %c0_4] : memref<1x32xf32, #tpu.memory_space<vmem>>, vector<1x32xf32>
    %cst = arith.constant dense<0.000000e+00> : vector<1xf32>
    %3 = vector.multi_reduction <add>, %2, %cst [1] : vector<1x32xf32> to vector<1xf32>
    %4 = vector.shape_cast %3 : vector<1xf32> to vector<1x1xf32>
    %cst_5 = arith.constant 3.200000e+01 : f32
    %5 = vector.broadcast %cst_5 : f32 to vector<1x1xf32>
    %6 = arith.divf %4, %5 : vector<1x1xf32>
    %7 = vector.broadcast %6 : vector<1x1xf32> to vector<1x32xf32>
    %8 = arith.subf %2, %7 : vector<1x32xf32>
    %9 = arith.mulf %8, %8 : vector<1x32xf32>
    %cst_6 = arith.constant dense<0.000000e+00> : vector<1xf32>
    %10 = vector.multi_reduction <add>, %9, %cst_6 [1] : vector<1x32xf32> to vector<1xf32>
    %11 = vector.shape_cast %10 : vector<1xf32> to vector<1x1xf32>
    %cst_7 = arith.constant 3.200000e+01 : f32
    %12 = vector.broadcast %cst_7 : f32 to vector<1x1xf32>
    %13 = arith.divf %11, %12 : vector<1x1xf32>
    %cst_8 = arith.constant 9.99999974E-6 : f32
    %14 = vector.broadcast %cst_8 : f32 to vector<1x1xf32>
    %15 = arith.addf %13, %14 : vector<1x1xf32>
    %16 = math.rsqrt %15 : vector<1x1xf32>
    %17 = vector.broadcast %16 : vector<1x1xf32> to vector<1x32xf32>
    %18 = arith.mulf %8, %17 : vector<1x32xf32>
    %19 = arith.mulf %18, %0 : vector<1x32xf32>
    %20 = arith.addf %19, %1 : vector<1x32xf32>
    %21 = arith.truncf %20 : vector<1x32xf32> to vector<1x32xbf16>
    %c0_9 = arith.constant 0 : index
    %c0_10 = arith.constant 0 : index
    %22 = vector.load %arg5[%c0_9, %c0_10] : memref<32x32xbf16, #tpu.memory_space<vmem>>, vector<32x32xbf16>
    %cst_11 = arith.constant dense<0.000000e+00> : vector<1x32xf32>
    %23 = tpu.matmul %21, %22, %cst_11 {dimension_numbers = #tpu.dot_dimension_numbers<[1], [0], [0], [1], [0, 0, 1, 1], [], []>} : vector<1x32xbf16>, vector<32x32xbf16>, vector<1x32xf32> -> vector<1x32xf32>
    %c0_12 = arith.constant 0 : index
    %c0_13 = arith.constant 0 : index
    %24 = vector.load %arg8[%c0_12, %c0_13] : memref<1x32xf32, #tpu.memory_space<vmem>>, vector<1x32xf32>
    %25 = arith.addf %23, %24 : vector<1x32xf32>
    %c0_14 = arith.constant 0 : index
    %c0_15 = arith.constant 0 : index
    %26 = vector.load %arg6[%c0_14, %c0_15] : memref<32x32xbf16, #tpu.memory_space<vmem>>, vector<32x32xbf16>
    %cst_16 = arith.constant dense<0.000000e+00> : vector<1x32xf32>
    %27 = tpu.matmul %21, %26, %cst_16 {dimension_numbers = #tpu.dot_dimension_numbers<[1], [0], [0], [1], [0, 0, 1, 1], [], []>} : vector<1x32xbf16>, vector<32x32xbf16>, vector<1x32xf32> -> vector<1x32xf32>
    %c0_17 = arith.constant 0 : index
    %c0_18 = arith.constant 0 : index
    %28 = vector.load %arg9[%c0_17, %c0_18] : memref<1x32xf32, #tpu.memory_space<vmem>>, vector<1x32xf32>
    %29 = arith.addf %27, %28 : vector<1x32xf32>
    %c0_19 = arith.constant 0 : index
    %c0_20 = arith.constant 0 : index
    %30 = vector.load %arg7[%c0_19, %c0_20] : memref<32x32xbf16, #tpu.memory_space<vmem>>, vector<32x32xbf16>
    %cst_21 = arith.constant dense<0.000000e+00> : vector<1x32xf32>
    %31 = tpu.matmul %21, %30, %cst_21 {dimension_numbers = #tpu.dot_dimension_numbers<[1], [0], [0], [1], [0, 0, 1, 1], [], []>} : vector<1x32xbf16>, vector<32x32xbf16>, vector<1x32xf32> -> vector<1x32xf32>
    %c0_22 = arith.constant 0 : index
    %c0_23 = arith.constant 0 : index
    %32 = vector.load %arg10[%c0_22, %c0_23] : memref<1x32xf32, #tpu.memory_space<vmem>>, vector<1x32xf32>
    %33 = arith.addf %31, %32 : vector<1x32xf32>
    %c0_24 = arith.constant 0 : index
    %c0_25 = arith.constant 0 : index
    %c0_26 = arith.constant 0 : index
    %34 = vector.load %arg1[%c0_24, %c0_25, %c0_26] : memref<2x8x32xf32, #tpu.memory_space<vmem>>, vector<2x8x32xf32>
    %35 = vector.shape_cast %34 : vector<2x8x32xf32> to vector<16x32xf32>
    %cst_27 = arith.constant dense<0.000000e+00> : vector<16xf32>
    %36 = vector.multi_reduction <add>, %35, %cst_27 [1] : vector<16x32xf32> to vector<16xf32>
    %37 = vector.shape_cast %36 : vector<16xf32> to vector<16x1xf32>
    %cst_28 = arith.constant 3.200000e+01 : f32
    %38 = vector.broadcast %cst_28 : f32 to vector<16x1xf32>
    %39 = arith.divf %37, %38 : vector<16x1xf32>
    %40 = vector.broadcast %39 : vector<16x1xf32> to vector<16x32xf32>
    %41 = arith.subf %35, %40 : vector<16x32xf32>
    %42 = arith.mulf %41, %41 : vector<16x32xf32>
    %cst_29 = arith.constant dense<0.000000e+00> : vector<16xf32>
    %43 = vector.multi_reduction <add>, %42, %cst_29 [1] : vector<16x32xf32> to vector<16xf32>
    %44 = vector.shape_cast %43 : vector<16xf32> to vector<16x1xf32>
    %cst_30 = arith.constant 3.200000e+01 : f32
    %45 = vector.broadcast %cst_30 : f32 to vector<16x1xf32>
    %46 = arith.divf %44, %45 : vector<16x1xf32>
    %cst_31 = arith.constant 9.99999974E-6 : f32
    %47 = vector.broadcast %cst_31 : f32 to vector<16x1xf32>
    %48 = arith.addf %46, %47 : vector<16x1xf32>
    %49 = math.rsqrt %48 : vector<16x1xf32>
    %50 = vector.broadcast %49 : vector<16x1xf32> to vector<16x32xf32>
    %51 = arith.mulf %41, %50 : vector<16x32xf32>
    %52 = vector.broadcast %0 : vector<1x32xf32> to vector<16x32xf32>
    %53 = arith.mulf %51, %52 : vector<16x32xf32>
    %54 = vector.broadcast %1 : vector<1x32xf32> to vector<16x32xf32>
    %55 = arith.addf %53, %54 : vector<16x32xf32>
    %56 = arith.truncf %55 : vector<16x32xf32> to vector<16x32xbf16>
    %c0_32 = arith.constant 0 : index
    %c0_33 = arith.constant 0 : index
    %57 = vector.load %arg6[%c0_32, %c0_33] : memref<32x32xbf16, #tpu.memory_space<vmem>>, vector<32x32xbf16>
    %cst_34 = arith.constant dense<0.000000e+00> : vector<16x32xf32>
    %58 = tpu.matmul %56, %57, %cst_34 {dimension_numbers = #tpu.dot_dimension_numbers<[1], [0], [0], [1], [0, 0, 1, 1], [], []>} : vector<16x32xbf16>, vector<32x32xbf16>, vector<16x32xf32> -> vector<16x32xf32>
    %c0_35 = arith.constant 0 : index
    %c0_36 = arith.constant 0 : index
    %59 = vector.load %arg9[%c0_35, %c0_36] : memref<1x32xf32, #tpu.memory_space<vmem>>, vector<1x32xf32>
    %60 = vector.broadcast %59 : vector<1x32xf32> to vector<16x32xf32>
    %61 = arith.addf %58, %60 : vector<16x32xf32>
    %c0_37 = arith.constant 0 : index
    %c0_38 = arith.constant 0 : index
    %62 = vector.load %arg7[%c0_37, %c0_38] : memref<32x32xbf16, #tpu.memory_space<vmem>>, vector<32x32xbf16>
    %cst_39 = arith.constant dense<0.000000e+00> : vector<16x32xf32>
    %63 = tpu.matmul %56, %62, %cst_39 {dimension_numbers = #tpu.dot_dimension_numbers<[1], [0], [0], [1], [0, 0, 1, 1], [], []>} : vector<16x32xbf16>, vector<32x32xbf16>, vector<16x32xf32> -> vector<16x32xf32>
    %c0_40 = arith.constant 0 : index
    %c0_41 = arith.constant 0 : index
    %64 = vector.load %arg10[%c0_40, %c0_41] : memref<1x32xf32, #tpu.memory_space<vmem>>, vector<1x32xf32>
    %65 = vector.broadcast %64 : vector<1x32xf32> to vector<16x32xf32>
    %66 = arith.addf %63, %65 : vector<16x32xf32>
    %67 = vector.broadcast %25 : vector<1x32xf32> to vector<16x32xf32>
    %68 = arith.mulf %67, %61 : vector<16x32xf32>
    %c0_42 = arith.constant 0 : index
    %c0_43 = arith.constant 0 : index
    %69 = vector.load %arg13[%c0_42, %c0_43] : memref<32x4xf32, #tpu.memory_space<vmem>>, vector<32x4xf32>
    %cst_44 = arith.constant dense<0.000000e+00> : vector<16x4xf32>
    %70 = tpu.matmul %68, %69, %cst_44 {dimension_numbers = #tpu.dot_dimension_numbers<[1], [0], [0], [1], [0, 0, 1, 1], [], []>} : vector<16x32xf32>, vector<32x4xf32>, vector<16x4xf32> -> vector<16x4xf32>
    %cst_45 = arith.constant 0.353553385 : f32
    %71 = vector.broadcast %cst_45 : f32 to vector<16x4xf32>
    %72 = arith.mulf %70, %71 : vector<16x4xf32>
    %73 = arith.mulf %25, %29 : vector<1x32xf32>
    %c0_46 = arith.constant 0 : index
    %c0_47 = arith.constant 0 : index
    %74 = vector.load %arg13[%c0_46, %c0_47] : memref<32x4xf32, #tpu.memory_space<vmem>>, vector<32x4xf32>
    %cst_48 = arith.constant dense<0.000000e+00> : vector<1x4xf32>
    %75 = tpu.matmul %73, %74, %cst_48 {dimension_numbers = #tpu.dot_dimension_numbers<[1], [0], [0], [1], [0, 0, 1, 1], [], []>} : vector<1x32xf32>, vector<32x4xf32>, vector<1x4xf32> -> vector<1x4xf32>
    %cst_49 = arith.constant 0.353553385 : f32
    %76 = vector.broadcast %cst_49 : f32 to vector<1x4xf32>
    %77 = arith.mulf %75, %76 : vector<1x4xf32>
    %78 = vector.shape_cast %72 : vector<16x4xf32> to vector<2x8x4xf32>
    %cst_50 = arith.constant dense<0xFF800000> : vector<2x4xf32>
    %79 = vector.multi_reduction <maximumf>, %78, %cst_50 [1] : vector<2x8x4xf32> to vector<2x4xf32>
    %80 = vector.broadcast %77 : vector<1x4xf32> to vector<2x4xf32>
    %81 = arith.maximumf %79, %80 : vector<2x4xf32>
    %82 = vector.shape_cast %81 : vector<2x4xf32> to vector<2x1x4xf32>
    %83 = vector.broadcast %82 : vector<2x1x4xf32> to vector<2x8x4xf32>
    %84 = arith.subf %78, %83 : vector<2x8x4xf32>
    %85 = math.exp %84 : vector<2x8x4xf32>
    %86 = vector.broadcast %77 : vector<1x4xf32> to vector<2x4xf32>
    %87 = arith.subf %86, %81 : vector<2x4xf32>
    %88 = math.exp %87 : vector<2x4xf32>
    %cst_51 = arith.constant dense<0.000000e+00> : vector<2x4xf32>
    %89 = vector.multi_reduction <add>, %85, %cst_51 [1] : vector<2x8x4xf32> to vector<2x4xf32>
    %90 = arith.addf %89, %88 : vector<2x4xf32>
    %91 = tpu.reciprocal %90 {approx = true} : vector<2x4xf32> -> vector<2x4xf32>
    %92 = vector.shape_cast %91 : vector<2x4xf32> to vector<2x1x4xf32>
    %93 = vector.broadcast %92 : vector<2x1x4xf32> to vector<2x8x4xf32>
    %94 = arith.mulf %85, %93 : vector<2x8x4xf32>
    %95 = arith.mulf %88, %91 : vector<2x4xf32>
    %96 = vector.shape_cast %94 : vector<2x8x4xf32> to vector<16x4xf32>
    %c0_52 = arith.constant 0 : index
    %c0_53 = arith.constant 0 : index
    %97 = vector.load %arg14[%c0_52, %c0_53] : memref<4x32xf32, #tpu.memory_space<vmem>>, vector<4x32xf32>
    %cst_54 = arith.constant dense<0.000000e+00> : vector<16x32xf32>
    %98 = tpu.matmul %96, %97, %cst_54 {dimension_numbers = #tpu.dot_dimension_numbers<[1], [0], [0], [1], [0, 0, 1, 1], [], []>} : vector<16x4xf32>, vector<4x32xf32>, vector<16x32xf32> -> vector<16x32xf32>
    %c0_55 = arith.constant 0 : index
    %c0_56 = arith.constant 0 : index
    %99 = vector.load %arg14[%c0_55, %c0_56] : memref<4x32xf32, #tpu.memory_space<vmem>>, vector<4x32xf32>
    %cst_57 = arith.constant dense<0.000000e+00> : vector<2x32xf32>
    %100 = tpu.matmul %95, %99, %cst_57 {dimension_numbers = #tpu.dot_dimension_numbers<[1], [0], [0], [1], [0, 0, 1, 1], [], []>} : vector<2x4xf32>, vector<4x32xf32>, vector<2x32xf32> -> vector<2x32xf32>
    %101 = arith.mulf %98, %66 : vector<16x32xf32>
    %102 = vector.shape_cast %101 : vector<16x32xf32> to vector<2x8x32xf32>
    %cst_58 = arith.constant dense<0.000000e+00> : vector<2x32xf32>
    %103 = vector.multi_reduction <add>, %102, %cst_58 [1] : vector<2x8x32xf32> to vector<2x32xf32>
    %104 = vector.broadcast %33 : vector<1x32xf32> to vector<2x32xf32>
    %105 = arith.mulf %100, %104 : vector<2x32xf32>
    %106 = arith.addf %103, %105 : vector<2x32xf32>
    %107 = arith.truncf %106 : vector<2x32xf32> to vector<2x32xbf16>
    %c0_59 = arith.constant 0 : index
    %c0_60 = arith.constant 0 : index
    %108 = vector.load %arg11[%c0_59, %c0_60] : memref<32x32xbf16, #tpu.memory_space<vmem>>, vector<32x32xbf16>
    %cst_61 = arith.constant dense<0.000000e+00> : vector<2x32xf32>
    %109 = tpu.matmul %107, %108, %cst_61 {dimension_numbers = #tpu.dot_dimension_numbers<[1], [0], [0], [1], [0, 0, 1, 1], [], []>} : vector<2x32xbf16>, vector<32x32xbf16>, vector<2x32xf32> -> vector<2x32xf32>
    %c0_62 = arith.constant 0 : index
    %c0_63 = arith.constant 0 : index
    %110 = vector.load %arg12[%c0_62, %c0_63] : memref<1x32xf32, #tpu.memory_space<vmem>>, vector<1x32xf32>
    %111 = vector.broadcast %110 : vector<1x32xf32> to vector<2x32xf32>
    %112 = arith.addf %109, %111 : vector<2x32xf32>
    %c0_64 = arith.constant 0 : index
    %c0_65 = arith.constant 0 : index
    %c0_66 = arith.constant 0 : index
    %113 = vector.load %arg15[%c0_64, %c0_65, %c0_66] : memref<1x2x32xf32, #tpu.memory_space<vmem>>, vector<1x2x32xf32>
    %114 = vector.shape_cast %113 : vector<1x2x32xf32> to vector<2x32xf32>
    %115 = vector.shape_cast %112 : vector<2x32xf32> to vector<1x2x32xf32>
    tpu.vector_store %arg15[%c0_64, %c0_65, %c0_66], %115 {strides = array<i32>} : memref<1x2x32xf32, #tpu.memory_space<vmem>>, vector<1x2x32xf32>,
    return
  }
  func.func @transform_0(%arg0: i32) -> (i32, i32, i32) {
    %c0_i32 = arith.constant 0 : i32
    %c0_i32_0 = arith.constant 0 : i32
    %c0_i32_1 = arith.constant 0 : i32
    return %arg0, %c0_i32, %c0_i32_0 : i32, i32, i32
  }
  func.func @transform_1(%arg0: i32) -> (i32, i32) {
    %c0_i32 = arith.constant 0 : i32
    %c0_i32_0 = arith.constant 0 : i32
    %c0_i32_1 = arith.constant 0 : i32
    return %c0_i32, %c0_i32_0 : i32, i32
  }
  func.func @transform_2(%arg0: i32) -> (i32, i32) {
    %c0_i32 = arith.constant 0 : i32
    %c0_i32_0 = arith.constant 0 : i32
    %c0_i32_1 = arith.constant 0 : i32
    return %c0_i32, %c0_i32_0 : i32, i32
  }
  func.func @transform_3(%arg0: i32) -> (i32, i32) {
    %c0_i32 = arith.constant 0 : i32
    %c0_i32_0 = arith.constant 0 : i32
    %c0_i32_1 = arith.constant 0 : i32
    return %c0_i32, %c0_i32_0 : i32, i32
  }
  func.func @transform_4(%arg0: i32) -> (i32, i32) {
    %c0_i32 = arith.constant 0 : i32
    %c0_i32_0 = arith.constant 0 : i32
    %c0_i32_1 = arith.constant 0 : i32
    return %c0_i32, %c0_i32_0 : i32, i32
  }
  func.func @transform_5(%arg0: i32) -> (i32, i32) {
    %c0_i32 = arith.constant 0 : i32
    %c0_i32_0 = arith.constant 0 : i32
    %c0_i32_1 = arith.constant 0 : i32
    return %c0_i32, %c0_i32_0 : i32, i32
  }
  func.func @transform_6(%arg0: i32) -> (i32, i32) {
    %c0_i32 = arith.constant 0 : i32
    %c0_i32_0 = arith.constant 0 : i32
    %c0_i32_1 = arith.constant 0 : i32
    return %c0_i32, %c0_i32_0 : i32, i32
  }
  func.func @transform_7(%arg0: i32) -> (i32, i32) {
    %c0_i32 = arith.constant 0 : i32
    %c0_i32_0 = arith.constant 0 : i32
    %c0_i32_1 = arith.constant 0 : i32
    return %c0_i32, %c0_i32_0 : i32, i32
  }
  func.func @transform_8(%arg0: i32) -> (i32, i32) {
    %c0_i32 = arith.constant 0 : i32
    %c0_i32_0 = arith.constant 0 : i32
    %c0_i32_1 = arith.constant 0 : i32
    return %c0_i32, %c0_i32_0 : i32, i32
  }
  func.func @transform_9(%arg0: i32) -> (i32, i32) {
    %c0_i32 = arith.constant 0 : i32
    %c0_i32_0 = arith.constant 0 : i32
    %c0_i32_1 = arith.constant 0 : i32
    return %c0_i32, %c0_i32_0 : i32, i32
  }
  func.func @transform_10(%arg0: i32) -> (i32, i32) {
    %c0_i32 = arith.constant 0 : i32
    %c0_i32_0 = arith.constant 0 : i32
    %c0_i32_1 = arith.constant 0 : i32
    return %c0_i32, %c0_i32_0 : i32, i32
  }
  func.func @transform_11(%arg0: i32) -> (i32, i32) {
    %c0_i32 = arith.constant 0 : i32
    %c0_i32_0 = arith.constant 0 : i32
    %c0_i32_1 = arith.constant 0 : i32
    return %c0_i32, %c0_i32_0 : i32, i32
  }
  func.func @transform_12(%arg0: i32) -> (i32, i32) {
    %c0_i32 = arith.constant 0 : i32
    %c0_i32_0 = arith.constant 0 : i32
    %c0_i32_1 = arith.constant 0 : i32
    return %c0_i32, %c0_i32_0 : i32, i32
  }
  func.func @transform_13(%arg0: i32) -> (i32, i32) {
    %c0_i32 = arith.constant 0 : i32
    %c0_i32_0 = arith.constant 0 : i32
    %c0_i32_1 = arith.constant 0 : i32
    return %c0_i32, %c0_i32_0 : i32, i32
  }
  func.func @transform_14(%arg0: i32) -> (i32, i32, i32) {
    %c0_i32 = arith.constant 0 : i32
    %c0_i32_0 = arith.constant 0 : i32
    %c0_i32_1 = arith.constant 0 : i32
    return %arg0, %c0_i32, %c0_i32_0 : i32, i32, i32
  }
}

</mosaic_0001>

<bundles_post_ra>
// kernel: tpu_custom_call.1
= control target key start
LH: loop header
LB: loop body
LE: loop exit
PB: predicated region body
PF: predicated region fallthrough
CT: control target
= control target key end

     0   :  { %s3272_s0 = inlined_call_operand.hbm [shape: f32[4,8,32], index: 0, kind: input, shape index: {}]   ;;  %s3273_s1 = inlined_call_operand.hbm [shape: f32[1,32], index: 1, kind: input, shape index: {}]   ;;  %s3274_s2 = inlined_call_operand.hbm [shape: f32[1,32], index: 2, kind: input, shape index: {}]   ;;  %s3275_s3 = inlined_call_operand.hbm [shape: f32[1,32], index: 3, kind: input, shape index: {}]   ;;  %s3276_s4 = inlined_call_operand.hbm [shape: bf16[32,32], index: 4, kind: input, shape index: {}]   ;;  %s3277_s5 = inlined_call_operand.hbm [shape: bf16[32,32], index: 5, kind: input, shape index: {}]   ;;  %s3278_s6 = inlined_call_operand.hbm [shape: bf16[32,32], index: 6, kind: input, shape index: {}]   ;;  %s3279_s7 = inlined_call_operand.hbm [shape: f32[1,32], index: 7, kind: input, shape index: {}]   ;;  %s3280_s8 = inlined_call_operand.hbm [shape: f32[1,32], index: 8, kind: input, shape index: {}]   ;;  %s3281_s9 = inlined_call_operand.hbm [shape: f32[1,32], index: 9, kind: input, shape index: {}]   ;;  %s3282_s10 = inlined_call_operand.hbm [shape: bf16[32,32], index: 10, kind: input, shape index: {}]   ;;  %s3283_s11 = inlined_call_operand.hbm [shape: f32[1,32], index: 11, kind: input, shape index: {}]   ;;  %s3284_s12 = inlined_call_operand.hbm [shape: f32[32,4], index: 12, kind: input, shape index: {}]   ;;  %s3285_s13 = inlined_call_operand.hbm [shape: f32[4,32], index: 13, kind: input, shape index: {}]   ;;  %s3286_s14 = inlined_call_operand.hbm [shape: f32[2,2,32], index: 14, kind: output, shape index: {}]  }
   0x1   :  { %3298 = sst [smem:[#allocation39_spill]] %s3272_s0 }
   0x2   :  { %3299 = sst [smem:[#allocation40_spill]] %s3273_s1 }
   0x3   :  { %3300 = sst [smem:[#allocation41_spill]] %s3275_s3 }
   0x4   :  { %3301 = sst [smem:[#allocation42_spill]] %s3286_s14 }
   0x5   :  { %19 = vsyncpa [#allocation3], 0 }
   0x6   :  { %21 = vsyncpa [#allocation3 + $0x1], 0 }
   0x7   :  { %22 = vsyncpa [#allocation6], 0 }
   0x8   :  { %23 = vsyncpa [#allocation9], 0 }
   0x9   :  { %24 = vsyncpa [#allocation12], 0 }
   0xa   :  { %25 = vsyncpa [#allocation15], 0 }
   0xb   :  { %26 = vsyncpa [#allocation18], 0 }
   0xc   :  { %27 = vsyncpa [#allocation21], 0 }
   0xd   :  { %28 = vsyncpa [#allocation24], 0 }
   0xe   :  { %29 = vsyncpa [#allocation4], 0 }
   0xf   :  { %31 = vsyncpa [#allocation4 + $0x1], 0  ;;  %s2706_s29 = smov 0   ;;  %s2708_s30 = smov 0  }
  0x10   :  { %s2710_s15 = smov 0   ;;  %s2712_s16 = smov 0  }
  0x11 LB: > { %3302 = sst [smem:[#allocation35_spill]] %s2595_s29  ;;  %s2609_s17 = smov [#allocation5]   ;;  %s2607_s16 = sphi %s2712_s16, %s3347_s16   ;;  %s2603_s15 = sphi %s2710_s15, %s3346_s15   ;;  %s2599_s30 = sphi %s2708_s30, %s3345_s30   ;;  %s2595_s29 = sphi %s2706_s29, %s3344_s29  }
  0x12   : > { %3303 = sst [smem:[#allocation36_spill]] %s2599_s30  ;;  %s380_s18 = sshll.u32 %s2609_s17, 4  ;;  %s2732_s18 = int_to_ptr.vmem [resolvable:$true] %s380_s18 }
  0x13   : > { %s2727_s19 = sadd.s32 4294967295, %s2607_s16   ;;  %p1721_p0 = scmp.ge.s32.totalorder %s2607_s16, 1 }
  0x14   : > { %3304 = sst [smem:[#allocation37_spill]] %s2727_s19  ;;  %p3294_p1 = scmp.eq.s32.totalorder %s2727_s19, 0 }
  0x15   : > { %p367_p2 = scmp.lt.s32.totalorder %s2607_s16, 3  ;;  %s2610_s21 = smov [#allocation8]  }
  0x16   : > { %s402_s22 = sshll.u32 %s2610_s21, 4  ;;  %s2611_s24 = smov [#allocation11]   ;;  %s2741_s22 = int_to_ptr.vmem [resolvable:$true] %s402_s22 }
  0x17   : > { %p2734_p3 = pnand %p1721_p0, %p367_p2  ;;  %s425_s25 = sshll.u32 %s2611_s24, 4  ;;  %s2749_s25 = int_to_ptr.vmem [resolvable:$true] %s425_s25 }
  0x18   : > { %s3308_s1 = sld [smem:[#allocation40_spill]] }
  0x19   : > { %s3305_s20 = scalar_select %p2734_p3, 1, 0 }
  0x1a   : > { %p1967_p5 = pneg %p2734_p3 }
  0x1b   : > { %3306 = sst [smem:[#allocation38_spill]] %s3305_s20 }
  0x1c   : > { %p2745_p6 = pnand %p1967_p5, %p3294_p1 }
  0x1e   : > { %s2119_s28 = scalar_lea.hbm %s3308_s1, 16  ;;  %p2759_p8 = pneg %p2745_p6 }
  0x1f   : > { %p2120_p7 = scmp.ne.s32.totalorder %s3308_s1, %s2119_s28  ;;  %p2126_p11 = scmp.lt.u32.totalorder %s2119_s28, %s3308_s1 }
  0x21   : > { %p2122_p9 = pnand %p2759_p8, %p2120_p7 }
  0x23   : > { %p2123_p10 = pneg %p2122_p9 }
  0x25   : > { %p2128_p12 = pnand %p2126_p11, %p2123_p10 }
  0x27   : > { %2131 = shalt.err (!%p2128_p12)
}
  0x28   : > { %s2132_s14 = scalar_lea.vmem %s2732_s18, 16  ;;  %s2139_s26 = scalar_lea.vmem %s2732_s18, 32 }
  0x29   : > { %p2133_p13 = scmp.ne.s32.totalorder %s2732_s18, %s2132_s14  ;;  %p2140_p5 = scmp.lt.s32.totalorder %s2732_s18, %s2732_s18 }
  0x2a   : > { %p2141_p7 = scmp.lt.s32.totalorder %s2139_s26, %s2132_s14 }
  0x2b   : > { %p2135_p0 = pnand %p2133_p13, %p2759_p8 }
  0x2c   : > { %p2142_p9 = por %p2141_p7, %p2140_p5 }
  0x2d   : > { %p2136_p2 = pneg %p2135_p0 }
  0x2f   : > { %p2143_p4 = pnand %p2142_p9, %p2136_p2 }
  0x31   : > { %2146 = shalt.err (!%p2143_p4)
}
  0x32   : > { %1970 = dma.hbm_to_vmem [thread:$0]  (!%p2745_p6), %s3308_s1, 16, %s2732_s18, [#allocation6]  }
  0x33   : > { %s3310_s3 = sld [smem:[#allocation41_spill]] }
  0x39   : > { %s2147_s24 = scalar_lea.hbm %s3310_s3, 16 }
  0x3a   : > { %p2148_p10 = scmp.ne.s32.totalorder %s3310_s3, %s2147_s24  ;;  %p2154_p4 = scmp.lt.u32.totalorder %s2147_s24, %s3310_s3 }
  0x3c   : > { %p2150_p11 = pnand %p2148_p10, %p2759_p8 }
  0x3e   : > { %p2151_p12 = pneg %p2150_p11 }
  0x40   : > { %p2156_p13 = pnand %p2154_p4, %p2151_p12 }
  0x42   : > { %2159 = shalt.err (!%p2156_p13)
}
  0x43   : > { %s2160_s18 = scalar_lea.vmem %s2741_s22, 16  ;;  %s2167_s0 = scalar_lea.vmem %s2741_s22, 32 }
  0x44   : > { %p2161_p0 = scmp.ne.s32.totalorder %s2741_s22, %s2160_s18  ;;  %p2168_p7 = scmp.lt.s32.totalorder %s2741_s22, %s2741_s22 }
  0x45   : > { %p2169_p9 = scmp.lt.s32.totalorder %s2167_s0, %s2160_s18 }
  0x46   : > { %p2163_p2 = pnand %p2161_p0, %p2759_p8 }
  0x47   : > { %p2170_p10 = por %p2169_p9, %p2168_p7 }
  0x48   : > { %p2164_p5 = pneg %p2163_p2 }
  0x4a   : > { %p2171_p11 = pnand %p2170_p10, %p2164_p5 }
  0x4c   : > { %2174 = shalt.err (!%p2171_p11)
}
  0x4d   : > { %1976 = dma.hbm_to_vmem [thread:$0]  (!%p2745_p6), %s3310_s3, 16, %s2741_s22, [#allocation9]  }
  0x4e   : > { %s2175_s17 = scalar_lea.hbm %s3277_s5, 256 }
  0x4f   : > { %p2176_p12 = scmp.ne.s32.totalorder %s3277_s5, %s2175_s17  ;;  %p2182_p0 = scmp.lt.u32.totalorder %s2175_s17, %s3277_s5 }
  0x51   : > { %p2178_p4 = pnand %p2176_p12, %p2759_p8 }
  0x53   : > { %p2179_p13 = pneg %p2178_p4 }
  0x55   : > { %p2184_p2 = pnand %p2182_p0, %p2179_p13 }
  0x57   : > { %2187 = shalt.err (!%p2184_p2)
}
  0x58   : > { %s2188_s22 = scalar_lea.vmem %s2749_s25, 256  ;;  %p2196_p10 = scmp.lt.s32.totalorder %s2749_s25, %s2749_s25 }
  0x59   : > { %p2189_p5 = scmp.ne.s32.totalorder %s2749_s25, %s2188_s22  ;;  %p2197_p11 = scmp.lt.s32.totalorder %s2188_s22, %s2188_s22 }
  0x5b   : > { %p2191_p7 = pnand %p2189_p5, %p2759_p8  ;;  %p2198_p12 = por %p2197_p11, %p2196_p10 }
  0x5d   : > { %p2192_p9 = pneg %p2191_p7 }
  0x5f   : > { %p2199_p4 = pnand %p2198_p12, %p2192_p9 }
  0x61   : > { %2202 = shalt.err (!%p2199_p4)
}
  0x62   : > { %s2612_s0 = smov 64   ;;  %s2613_s19 = smov 4  }
  0x63   : > { %1982 = dma.hbm_to_vmem [thread:$0]  (!%p2745_p6), %s3277_s5, 256, %s2749_s25, [#allocation12], %s2612_s0, %s2612_s0, %s2613_s19  }
  0x64   : > { %s2614_s28 = smov [#allocation14]   ;;  %s2615_s24 = smov [#allocation17]  }
  0x65   : > { %s452_s17 = sshll.u32 %s2614_s28, 4  ;;  %s474_s14 = sshll.u32 %s2615_s24, 4  ;;  %s453_s17 = int_to_ptr.vmem [resolvable:$true] %s452_s17  ;;  %s475_s14 = int_to_ptr.vmem [resolvable:$true] %s474_s14 }
  0x66   : > { %s2203_s22 = scalar_lea.hbm %s3279_s7, 16 }
  0x67   : > { %p2204_p13 = scmp.ne.s32.totalorder %s3279_s7, %s2203_s22  ;;  %p2210_p5 = scmp.lt.u32.totalorder %s2203_s22, %s3279_s7 }
  0x69   : > { %p2206_p0 = pnand %p2204_p13, %p2759_p8 }
  0x6b   : > { %p2207_p2 = pneg %p2206_p0 }
  0x6d   : > { %p2212_p7 = pnand %p2210_p5, %p2207_p2 }
  0x6f   : > { %2215 = shalt.err (!%p2212_p7)
}
  0x70   : > { %s2216_s25 = scalar_lea.vmem %s453_s17, 16  ;;  %s2223_s20 = scalar_lea.vmem %s453_s17, 32 }
  0x71   : > { %p2217_p9 = scmp.ne.s32.totalorder %s453_s17, %s2216_s25  ;;  %p2224_p12 = scmp.lt.s32.totalorder %s453_s17, %s453_s17 }
  0x72   : > { %p2225_p4 = scmp.lt.s32.totalorder %s2223_s20, %s2216_s25 }
  0x73   : > { %p2219_p10 = pnand %p2217_p9, %p2759_p8 }
  0x74   : > { %p2226_p1 = por %p2225_p4, %p2224_p12 }
  0x75   : > { %p2220_p11 = pneg %p2219_p10 }
  0x77   : > { %p2227_p3 = pnand %p2226_p1, %p2220_p11 }
  0x79   : > { %2230 = shalt.err (!%p2227_p3)
}
  0x7a   : > { %1988 = dma.hbm_to_vmem [thread:$0]  (!%p2745_p6), %s3279_s7, 16, %s453_s17, [#allocation15]  }
  0x7b   : > { %s2231_s27 = scalar_lea.hbm %s3281_s9, 16 }
  0x7c   : > { %p2232_p13 = scmp.ne.s32.totalorder %s3281_s9, %s2231_s27  ;;  %p2238_p3 = scmp.lt.u32.totalorder %s2231_s27, %s3281_s9 }
  0x7e   : > { %p2234_p0 = pnand %p2232_p13, %p2759_p8 }
  0x80   : > { %p2235_p1 = pneg %p2234_p0 }
  0x82   : > { %p2240_p2 = pnand %p2238_p3, %p2235_p1 }
  0x84   : > { %2243 = shalt.err (!%p2240_p2)
}
  0x85   : > { %s2244_s22 = scalar_lea.vmem %s475_s14, 16  ;;  %s2251_s17 = scalar_lea.vmem %s475_s14, 32 }
  0x86   : > { %p2245_p5 = scmp.ne.s32.totalorder %s475_s14, %s2244_s22  ;;  %p2252_p10 = scmp.lt.s32.totalorder %s475_s14, %s475_s14 }
  0x87   : > { %p2253_p11 = scmp.lt.s32.totalorder %s2251_s17, %s2244_s22 }
  0x88   : > { %p2247_p7 = pnand %p2245_p5, %p2759_p8 }
  0x89   : > { %p2254_p12 = por %p2253_p11, %p2252_p10 }
  0x8a   : > { %p2248_p9 = pneg %p2247_p7 }
  0x8c   : > { %p2255_p4 = pnand %p2254_p12, %p2248_p9 }
  0x8e   : > { %2258 = shalt.err (!%p2255_p4)
}
  0x8f   : > { %1994 = dma.hbm_to_vmem [thread:$0]  (!%p2745_p6), %s3281_s9, 16, %s475_s14, [#allocation18]  }
  0x90   : > { %s2616_s1 = smov [#allocation20]   ;;  %s2617_s29 = smov [#allocation7]  }
  0x91   : > { %s498_s3 = sshll.u32 %s2616_s1, 4  ;;  %s391_s30 = sshll.u32 %s2617_s29, 4  ;;  %s499_s3 = int_to_ptr.vmem [resolvable:$true] %s498_s3  ;;  %s392_s30 = int_to_ptr.vmem [resolvable:$true] %s391_s30 }
  0x92   : > { %s2259_s24 = scalar_lea.hbm %s3283_s11, 16 }
  0x93   : > { %p2260_p13 = scmp.ne.s32.totalorder %s3283_s11, %s2259_s24  ;;  %p2266_p3 = scmp.lt.u32.totalorder %s2259_s24, %s3283_s11 }
  0x95   : > { %p2262_p0 = pnand %p2260_p13, %p2759_p8 }
  0x97   : > { %p2263_p1 = pneg %p2262_p0 }
  0x99   : > { %p2268_p2 = pnand %p2266_p3, %p2263_p1 }
  0x9b   : > { %2271 = shalt.err (!%p2268_p2)
}
  0x9c   : > { %s2272_s14 = scalar_lea.vmem %s499_s3, 16  ;;  %s2279_s25 = scalar_lea.vmem %s499_s3, 32 }
  0x9d   : > { %p2273_p5 = scmp.ne.s32.totalorder %s499_s3, %s2272_s14  ;;  %p2280_p10 = scmp.lt.s32.totalorder %s499_s3, %s499_s3 }
  0x9e   : > { %p2281_p11 = scmp.lt.s32.totalorder %s2279_s25, %s2272_s14 }
  0x9f   : > { %p2275_p7 = pnand %p2273_p5, %p2759_p8 }
  0xa0   : > { %p2282_p12 = por %p2281_p11, %p2280_p10 }
  0xa1   : > { %p2276_p9 = pneg %p2275_p7 }
  0xa3   : > { %p2283_p4 = pnand %p2282_p12, %p2276_p9 }
  0xa5   : > { %2286 = shalt.err (!%p2283_p4)
}
  0xa6   : > { %2000 = dma.hbm_to_vmem [thread:$0]  (!%p2745_p6), %s3283_s11, 16, %s499_s3, [#allocation21]  }
  0xa7   : > { %s2287_s28 = scalar_lea.hbm %s3274_s2, 16 }
  0xa8   : > { %p2288_p13 = scmp.ne.s32.totalorder %s3274_s2, %s2287_s28  ;;  %p2294_p3 = scmp.lt.u32.totalorder %s2287_s28, %s3274_s2 }
  0xaa   : > { %p2290_p0 = pnand %p2288_p13, %p2759_p8 }
  0xac   : > { %p2291_p1 = pneg %p2290_p0 }
  0xae   : > { %p2296_p2 = pnand %p2294_p3, %p2291_p1 }
  0xb0   : > { %2299 = shalt.err (!%p2296_p2)
}
  0xb1   : > { %s2300_s17 = scalar_lea.vmem %s392_s30, 16  ;;  %s2307_s3 = scalar_lea.vmem %s392_s30, 32 }
  0xb2   : > { %p2301_p5 = scmp.ne.s32.totalorder %s392_s30, %s2300_s17  ;;  %p2308_p10 = scmp.lt.s32.totalorder %s392_s30, %s392_s30 }
  0xb3   : > { %p2309_p11 = scmp.lt.s32.totalorder %s2307_s3, %s2300_s17 }
  0xb4   : > { %p2303_p7 = pnand %p2301_p5, %p2759_p8 }
  0xb5   : > { %p2310_p12 = por %p2309_p11, %p2308_p10 }
  0xb6   : > { %p2304_p9 = pneg %p2303_p7 }
  0xb8   : > { %p2311_p4 = pnand %p2310_p12, %p2304_p9 }
  0xba   : > { %2314 = shalt.err (!%p2311_p4)
}
  0xbb   : > { %1973 = dma.hbm_to_vmem [thread:$0]  (!%p2745_p6), %s3274_s2, 16, %s392_s30, [#allocation6]  }
  0xbc   : > { %s2618_s20 = smov [#allocation10]   ;;  %s2619_s29 = smov [#allocation13]  }
  0xbd   : > { %s412_s1 = sshll.u32 %s2618_s20, 4  ;;  %s438_s27 = sshll.u32 %s2619_s29, 4  ;;  %s413_s1 = int_to_ptr.vmem [resolvable:$true] %s412_s1  ;;  %s439_s27 = int_to_ptr.vmem [resolvable:$true] %s438_s27 }
  0xbe   : > { %s2315_s26 = scalar_lea.hbm %s3276_s4, 256 }
  0xbf   : > { %p2316_p13 = scmp.ne.s32.totalorder %s3276_s4, %s2315_s26  ;;  %p2322_p3 = scmp.lt.u32.totalorder %s2315_s26, %s3276_s4 }
  0xc1   : > { %p2318_p0 = pnand %p2316_p13, %p2759_p8 }
  0xc3   : > { %p2319_p1 = pneg %p2318_p0 }
  0xc5   : > { %p2324_p2 = pnand %p2322_p3, %p2319_p1 }
  0xc7   : > { %2327 = shalt.err (!%p2324_p2)
}
  0xc8   : > { %s2328_s30 = scalar_lea.vmem %s413_s1, 256  ;;  %p2336_p10 = scmp.lt.s32.totalorder %s413_s1, %s413_s1 }
  0xc9   : > { %p2329_p5 = scmp.ne.s32.totalorder %s413_s1, %s2328_s30  ;;  %p2337_p11 = scmp.lt.s32.totalorder %s2328_s30, %s2328_s30 }
  0xcb   : > { %p2331_p7 = pnand %p2329_p5, %p2759_p8  ;;  %p2338_p12 = por %p2337_p11, %p2336_p10 }
  0xcd   : > { %p2332_p9 = pneg %p2331_p7 }
  0xcf   : > { %p2339_p4 = pnand %p2338_p12, %p2332_p9 }
  0xd1   : > { %2342 = shalt.err (!%p2339_p4)
}
  0xd2   : > { %1979 = dma.hbm_to_vmem [thread:$0]  (!%p2745_p6), %s3276_s4, 256, %s413_s1, [#allocation9], %s2612_s0, %s2612_s0, %s2613_s19  }
  0xd3   : > { %s2343_s28 = scalar_lea.hbm %s3278_s6, 256 }
  0xd4   : > { %p2344_p13 = scmp.ne.s32.totalorder %s3278_s6, %s2343_s28  ;;  %p2350_p3 = scmp.lt.u32.totalorder %s2343_s28, %s3278_s6 }
  0xd6   : > { %p2346_p0 = pnand %p2344_p13, %p2759_p8 }
  0xd8   : > { %p2347_p1 = pneg %p2346_p0 }
  0xda   : > { %p2352_p2 = pnand %p2350_p3, %p2347_p1 }
  0xdc   : > { %2355 = shalt.err (!%p2352_p2)
}
  0xdd   : > { %s2356_s17 = scalar_lea.vmem %s439_s27, 256  ;;  %p2364_p10 = scmp.lt.s32.totalorder %s439_s27, %s439_s27 }
  0xde   : > { %p2357_p5 = scmp.ne.s32.totalorder %s439_s27, %s2356_s17  ;;  %p2365_p11 = scmp.lt.s32.totalorder %s2356_s17, %s2356_s17 }
  0xe0   : > { %p2359_p7 = pnand %p2357_p5, %p2759_p8  ;;  %p2366_p12 = por %p2365_p11, %p2364_p10 }
  0xe2   : > { %p2360_p9 = pneg %p2359_p7 }
  0xe4   : > { %p2367_p4 = pnand %p2366_p12, %p2360_p9 }
  0xe6   : > { %2370 = shalt.err (!%p2367_p4)
}
  0xe7   : > { %1985 = dma.hbm_to_vmem [thread:$0]  (!%p2745_p6), %s3278_s6, 256, %s439_s27, [#allocation12], %s2612_s0, %s2612_s0, %s2613_s19  }
  0xe8   : > { %s2620_s30 = smov [#allocation16]   ;;  %s2621_s25 = smov [#allocation19]  }
  0xe9   : > { %s463_s14 = sshll.u32 %s2620_s30, 4  ;;  %s484_s20 = sshll.u32 %s2621_s25, 4  ;;  %s464_s14 = int_to_ptr.vmem [resolvable:$true] %s463_s14  ;;  %s485_s20 = int_to_ptr.vmem [resolvable:$true] %s484_s20 }
  0xea   : > { %s2371_s24 = scalar_lea.hbm %s3280_s8, 16 }
  0xeb   : > { %p2372_p13 = scmp.ne.s32.totalorder %s3280_s8, %s2371_s24  ;;  %p2378_p3 = scmp.lt.u32.totalorder %s2371_s24, %s3280_s8 }
  0xed   : > { %p2374_p0 = pnand %p2372_p13, %p2759_p8 }
  0xef   : > { %p2375_p1 = pneg %p2374_p0 }
  0xf1   : > { %p2380_p2 = pnand %p2378_p3, %p2375_p1 }
  0xf3   : > { %2383 = shalt.err (!%p2380_p2)
}
  0xf4   : > { %s2384_s27 = scalar_lea.vmem %s464_s14, 16  ;;  %s2391_s1 = scalar_lea.vmem %s464_s14, 32 }
  0xf5   : > { %p2385_p5 = scmp.ne.s32.totalorder %s464_s14, %s2384_s27  ;;  %p2392_p10 = scmp.lt.s32.totalorder %s464_s14, %s464_s14 }
  0xf6   : > { %p2393_p11 = scmp.lt.s32.totalorder %s2391_s1, %s2384_s27 }
  0xf7   : > { %p2387_p7 = pnand %p2385_p5, %p2759_p8 }
  0xf8   : > { %p2394_p12 = por %p2393_p11, %p2392_p10 }
  0xf9   : > { %p2388_p9 = pneg %p2387_p7 }
  0xfb   : > { %p2395_p4 = pnand %p2394_p12, %p2388_p9 }
  0xfd   : > { %2398 = shalt.err (!%p2395_p4)
}
  0xfe   : > { %1991 = dma.hbm_to_vmem [thread:$0]  (!%p2745_p6), %s3280_s8, 16, %s464_s14, [#allocation15]  }
  0xff   : > { %s2399_s28 = scalar_lea.hbm %s3282_s10, 256 }
 0x100   : > { %p2400_p13 = scmp.ne.s32.totalorder %s3282_s10, %s2399_s28  ;;  %p2406_p3 = scmp.lt.u32.totalorder %s2399_s28, %s3282_s10 }
 0x102   : > { %p2402_p0 = pnand %p2400_p13, %p2759_p8 }
 0x104   : > { %p2403_p1 = pneg %p2402_p0 }
 0x106   : > { %p2408_p2 = pnand %p2406_p3, %p2403_p1 }
 0x108   : > { %2411 = shalt.err (!%p2408_p2)
}
 0x109   : > { %s2412_s17 = scalar_lea.vmem %s485_s20, 256  ;;  %p2420_p10 = scmp.lt.s32.totalorder %s485_s20, %s485_s20 }
 0x10a   : > { %p2413_p5 = scmp.ne.s32.totalorder %s485_s20, %s2412_s17  ;;  %p2421_p11 = scmp.lt.s32.totalorder %s2412_s17, %s2412_s17 }
 0x10c   : > { %p2415_p7 = pnand %p2413_p5, %p2759_p8  ;;  %p2422_p12 = por %p2421_p11, %p2420_p10 }
 0x10e   : > { %p2416_p9 = pneg %p2415_p7 }
 0x110   : > { %p2423_p4 = pnand %p2422_p12, %p2416_p9 }
 0x112   : > { %2426 = shalt.err (!%p2423_p4)
}
 0x113   : > { %1997 = dma.hbm_to_vmem [thread:$0]  (!%p2745_p6), %s3282_s10, 256, %s485_s20, [#allocation18], %s2612_s0, %s2612_s0, %s2613_s19  }
 0x114   : > { %s2622_s1 = smov [#allocation22]   ;;  %s2427_s29 = scalar_lea.hbm %s3284_s12, 512 }
 0x115   : > { %s508_s3 = sshll.u32 %s2622_s1, 4  ;;  %p2428_p13 = scmp.ne.s32.totalorder %s3284_s12, %s2427_s29  ;;  %s509_s3 = int_to_ptr.vmem [resolvable:$true] %s508_s3 }
 0x116   : > { %p2434_p3 = scmp.lt.u32.totalorder %s2427_s29, %s3284_s12 }
 0x117   : > { %p2430_p0 = pnand %p2428_p13, %p2759_p8 }
 0x119   : > { %p2431_p1 = pneg %p2430_p0 }
 0x11b   : > { %p2436_p2 = pnand %p2434_p3, %p2431_p1 }
 0x11d   : > { %2439 = shalt.err (!%p2436_p2)
}
 0x11e   : > { %s2440_s0 = scalar_lea.vmem %s509_s3, 512  ;;  %p2448_p10 = scmp.lt.s32.totalorder %s509_s3, %s509_s3 }
 0x11f   : > { %p2441_p5 = scmp.ne.s32.totalorder %s509_s3, %s2440_s0  ;;  %p2449_p11 = scmp.lt.s32.totalorder %s2440_s0, %s2440_s0 }
 0x121   : > { %p2443_p7 = pnand %p2441_p5, %p2759_p8  ;;  %p2450_p12 = por %p2449_p11, %p2448_p10 }
 0x123   : > { %p2444_p9 = pneg %p2443_p7 }
 0x125   : > { %p2451_p4 = pnand %p2450_p12, %p2444_p9 }
 0x127   : > { %2454 = shalt.err (!%p2451_p4)
}
 0x128   : > { %s3296_s19 = smov 128   ;;  %s2624_s20 = smov 8  }
 0x129   : > { %2003 = dma.hbm_to_vmem [thread:$0]  (!%p2745_p6), %s3284_s12, 512, %s509_s3, [#allocation21], %s3296_s19, %s3296_s19, %s2624_s20  }
 0x12a   : > { %s2625_s14 = smov [#allocation23]   ;;  %s2455_s25 = scalar_lea.hbm %s3285_s13, 64 }
 0x12b   : > { %s522_s27 = sshll.u32 %s2625_s14, 4  ;;  %p2456_p13 = scmp.ne.s32.totalorder %s3285_s13, %s2455_s25  ;;  %s523_s27 = int_to_ptr.vmem [resolvable:$true] %s522_s27 }
 0x12c   : > { %p2462_p3 = scmp.lt.u32.totalorder %s2455_s25, %s3285_s13 }
 0x12d   : > { %p2458_p0 = pnand %p2456_p13, %p2759_p8 }
 0x12f   : > { %p2459_p1 = pneg %p2458_p0 }
 0x131   : > { %p2464_p2 = pnand %p2462_p3, %p2459_p1 }
 0x133   : > { %2467 = shalt.err (!%p2464_p2)
}
 0x134   : > { %s2468_s3 = scalar_lea.vmem %s523_s27, 64  ;;  %p2476_p10 = scmp.lt.s32.totalorder %s523_s27, %s523_s27 }
 0x135   : > { %p2469_p5 = scmp.ne.s32.totalorder %s523_s27, %s2468_s3  ;;  %p2477_p11 = scmp.lt.s32.totalorder %s2468_s3, %s2468_s3 }
 0x137   : > { %p2471_p7 = pnand %p2469_p5, %p2759_p8  ;;  %p2478_p12 = por %p2477_p11, %p2476_p10 }
 0x139   : > { %p2472_p9 = pneg %p2471_p7 }
 0x13b   : > { %p2479_p4 = pnand %p2478_p12, %p2472_p9 }
 0x13d   : > { %2482 = shalt.err (!%p2479_p4)
}
 0x13e   : > { %s3311_s22 = sld [smem:[#allocation36_spill]]  ;;  %s3312_s21 = sld [smem:[#allocation35_spill]] }
 0x13f   : > { %s3313_s17 = sld [smem:[#allocation37_spill]]  ;;  %s1720_s14 = sadd.s32 4294967294, %s2607_s16  }
 0x140   : > { %2006 = dma.hbm_to_vmem [thread:$0]  (!%p2745_p6), %s3285_s13, 64, %s523_s27, [#allocation24]  }
 0x141   : > { %s3025_s23 = sadd.s32 1, %s2607_s16   ;;  %s44_s1 = sadd.s32 1, %s2603_s15 }
 0x142   : > { %s41_s30 = ssub.s32 %s2607_s16, %s3025_s23  ;;  %p52_p0 = scmp.eq.s32.totalorder %s2607_s16, 0 }
 0x143   : > { %p42_p13 = scmp.eq.s32.totalorder %s41_s30, 0  ;;  %p360_p9 = scmp.eq.s32.totalorder %s1720_s14, 1 }
 0x144   : > { %p51_p8 = scmp.ne.s32.totalorder %s2603_s15, %s3311_s22  ;;  %p57_p1 = scmp.ne.s32.totalorder %s3311_s22, %s3312_s21 }
 0x145   : > { %p354_p3 = scmp.eq.s32.totalorder %s3313_s17, 1  ;;  %p3314_p5 = scmp.eq.s32.totalorder %s3313_s17, 0 }
 0x146   : > { %s3037_s25 = scalar_select %p42_p13, %s2603_s15, %s44_s1  }
 0x147   : > { %p53_p2 = por %p52_p0, %p51_p8  ;;  %p3041_p7 = por %p3314_p5, %p57_p1 }
 0x148   : > { %p3045_p6 = por %p354_p3, %p51_p8  ;;  %p2028_p10 = scmp.lt.s32.totalorder %s2607_s16, 2 }
 0x149   : > { %s533_s28 = sand.u32 1, %s2603_s15   ;;  %p3051_p11 = por %p360_p9, %p57_p1 }
 0x14a   : > { %s3316_s27 = scalar_select %p3045_p6, 1, 0 }
 0x14b   : > { %s3317_s24 = scalar_select %p3051_p11, 1, 0 }
 0x14c   : > { %s1736_s26 = sshll.u32 %s533_s28, 4  ;;  %s1782_s3 = sshll.u32 %s2607_s16, 8 }
 0x14d   : > { %s3318_s22 = sld [smem:[#allocation39_spill]]  ;;  %s537_s17 = scalar_lea.vmem [#allocation2], %s1736_s26 }
 0x14e   : > { %s544_s1 = sshll.u32 %s537_s17, 4  ;;  %p3061_p12 = pnand %p2028_p10, %p53_p2  ;;  %s3065_s1 = int_to_ptr.vmem [resolvable:$true] %s544_s1 }
 0x14f   : > { %s3067_s30 = scalar_lea.sflag [#allocation3], %s533_s28 }
 0x150   : > { %p2485_p8 = pneg %p3061_p12 }
 0x153   : > { %s3059_s21 = scalar_lea.hbm %s3318_s22, %s1782_s3  ;;  %s2488_s18 = scalar_lea.hbm %s3318_s22, 512 }
 0x154   : > { %s2483_s19 = scalar_lea.hbm %s3059_s21, 256  ;;  %p2489_p1 = scmp.lt.u32.totalorder %s3059_s21, %s3318_s22 }
 0x155   : > { %p2484_p4 = scmp.ne.s32.totalorder %s3059_s21, %s2483_s19  ;;  %p2490_p3 = scmp.lt.u32.totalorder %s2488_s18, %s2483_s19 }
 0x156   : > { %p2492_p5 = scmp.lt.u32.totalorder %s2483_s19, %s3059_s21 }
 0x157   : > { %p2486_p13 = pnand %p2485_p8, %p2484_p4  ;;  %p2491_p2 = por %p2490_p3, %p2489_p1 }
 0x159   : > { %p2487_p0 = pneg %p2486_p13  ;;  %p2493_p9 = por %p2492_p5, %p2491_p2 }
 0x15b   : > { %p2494_p10 = pnand %p2493_p9, %p2487_p0 }
 0x15d   : > { %2497 = shalt.err (!%p2494_p10)
}
 0x15e   : > { %s2498_s28 = scalar_lea.vmem %s3065_s1, 256  ;;  %s2626_s26 = smov [#allocation2]  }
 0x15f   : > { %p2499_p4 = scmp.ne.s32.totalorder %s3065_s1, %s2498_s28  ;;  %s2503_s3 = sshll.u32 %s2626_s26, 4  ;;  %s2504_s3 = int_to_ptr.vmem [resolvable:$false] %s2503_s3 }
 0x160   : > { %s2505_s0 = scalar_lea.vmem %s2504_s3, 512  ;;  %p2506_p6 = scmp.lt.s32.totalorder %s3065_s1, %s2504_s3 }
 0x161   : > { %p2501_p13 = pnand %p2499_p4, %p2485_p8  ;;  %p2507_p1 = scmp.lt.s32.totalorder %s2505_s0, %s2498_s28 }
 0x163   : > { %p2502_p11 = pneg %p2501_p13  ;;  %p2508_p3 = por %p2507_p1, %p2506_p6 }
 0x165   : > { %p2509_p2 = pnand %p2508_p3, %p2502_p11 }
 0x167   : > { %2512 = shalt.err (!%p2509_p2)
}
 0x168   : > { %s3320_s19 = smov 128   ;;  %s3321_s18 = sld [smem:[#allocation38_spill]] }
 0x169   : > { %2010 = dma.hbm_to_vmem [thread:$0]  (!%p3061_p12), %s3059_s21, 256, %s3065_s1, %s3067_s30, %s3320_s19, %s3320_s19, %s2624_s20  }
 0x16e   : > { %p3322_p8 = scmp.ne.s32.totalorder %s3321_s18, 0 }
 0x16f   : > { %s3323_s17 = sld [smem:[#allocation36_spill]] (!%p3322_p8) }
 0x170   : > { %556 = sbr.rel (%p3322_p8) target bundleno = 1699 (0x6a3), region = 76 }
 0x175   : > { %s3101_s26 = sand.u32 (!%p3322_p8), 1, %s3323_s17  }
 0x176   : > { %s1740_s28 = sshll.u32 (!%p3322_p8), %s3101_s26, 4  ;;  %s559_s3 = scalar_lea.sflag (!%p3322_p8), [#allocation3], %s3101_s26 }
 0x177   : > { %s562_s0 = scalar_lea.vmem [#allocation2], %s1740_s28 }
 0x178   : > { %2558 = dma.done.wait (%p3041_p7), %s559_s3, 256  }
 0x179   : > { %2560 = vsyncadd (%p3041_p7), %s559_s3, 4294967040  ;;  %s3324_s14 = sld [smem:[#allocation37_spill]] }
 0x17f   : > { %p3325_p6 = scmp.eq.s32.totalorder %s3324_s14, 0 }
 0x181   : > { %2562 = dma.done.wait (%p3325_p6), [#allocation6], 32   ;;  %p3326_p11 = pmov %p3325_p6 }
 0x182   : > { %p3327_p12 = pmov %p3325_p6 }
 0x183   : > { %2564 = vsyncadd (%p3326_p11), [#allocation6], 4294967264 }
 0x184   : > { %2566 = dma.done.wait (%p3327_p12), [#allocation9], 272   ;;  %p3328_p0 = pmov %p3325_p6 }
 0x186   : > { %2568 = vsyncadd (%p3328_p0), [#allocation9], 4294967024  ;;  %p3329_p5 = pmov %p3328_p0 }
 0x187   : > { %p3330_p9 = pmov %p3328_p0 }
 0x188   : > { %2570 = dma.done.wait (%p3329_p5), [#allocation12], 512  }
 0x189   : > { %2572 = vsyncadd (%p3330_p9), [#allocation12], 4294966784  ;;  %p3331_p7 = pmov %p3328_p0 }
 0x18a   : > { %p3332_p10 = pmov %p3328_p0 }
 0x18b   : > { %2574 = dma.done.wait (%p3331_p7), [#allocation15], 32  }
 0x18c   : > { %2576 = vsyncadd (%p3332_p10), [#allocation15], 4294967264  ;;  %p3333_p4 = pmov %p3328_p0 }
 0x18d   : > { %p3334_p13 = pmov %p3328_p0 }
 0x18e   : > { %2578 = dma.done.wait (%p3333_p4), [#allocation18], 272  }
 0x18f   : > { %2580 = vsyncadd (%p3334_p13), [#allocation18], 4294967024  ;;  %p3335_p1 = pmov %p3328_p0 }
 0x190   : > { %p3336_p3 = pmov %p3328_p0 }
 0x191   : > { %2582 = dma.done.wait (%p3335_p1), [#allocation21], 528  }
 0x192   : > { %2584 = vsyncadd (%p3336_p3), [#allocation21], 4294966768  ;;  %p3337_p2 = pmov %p3328_p0 }
 0x193   : > { %p3338_p8 = pmov %p3328_p0 }
 0x194   : > { %2586 = dma.done.wait (%p3337_p2), [#allocation24], 64  }
 0x195   : > { %2588 = vsyncadd (%p3338_p8), [#allocation24], 4294967232  ;;  %vm664_vm0 = vcmask 253952   ;;  %vm699_vm1 = vcmask 261120   ;;  %v663_v0 = vld [vmem:[#allocation5] sm:$0x1]  ;;  %v886_v33 = vlaneseq }
 0x196   : > { %v858_v1 = vld [vmem:[%s562_s0 + $0x8] sm:$0xff]  ;;  %v857_v2 = vld [vmem:[%s562_s0] sm:$0xff]  ;;  %v665_v3 = vsel %vm664_vm0, %v663_v0, 0.0  ;;  %v2627_v23 = vmov 0.0   ;;  %vm2628_vm2 = vmmov 0   ;;  %v2629_v60 = vmov 0.0|0.0  }
 0x197   : > { %v862_v4 = vsel %vm699_vm1, %v858_v1, 0.0  ;;  %v859_v5 = vsel %vm699_vm1, %v857_v2, 0.0  ;;  %666 = vadd.xlane.f32.xlu0 %v665_v3  ;;  %v2095_v21 = vld [vmem:[#allocation10] sm:$0xff]   ;;  %1817 = vmatprep.subr.bf16.mxu1 %v2627_v23  ;;  %v2097_v24 = vld [vmem:[#allocation10 + $0x8] sm:$0xff]   ;;  %v887_v36 = vshrl.u32 %v886_v33, 7  ;;  %v2099_v49 = vld [vmem:[#allocation11] sm:$0xff]  }
 0x198   : > { %863 = vadd.xlane.f32.xlu1 %v862_v4  ;;  %v2096_v22 = vld [vmem:[#allocation13] sm:$0xff]   ;;  %1833 = vmatprep.subr.bf16.mxu0 %v2627_v23  ;;  %v2098_v25 = vld [vmem:[#allocation13 + $0x8] sm:$0xff]   ;;  %v661_v39 = vld [vmem:[#allocation7] sm:$0x1]  ;;  %vm1256_vm3 = vcmask 1043456   ;;  %vm1167_vm4 = vcmask 31744  }
 0x199   : > { %1818 = vmatpush3.bf16.msra.mxu1 %v2095_v21  ;;  %1834 = vmatpush3.bf16.msra.mxu0 %v2096_v22  ;;  %v3153_v37 = vsub.s32 0, %v887_v36  ;;  %v662_v41 = vld [vmem:[#allocation8] sm:$0x1]  ;;  %v1005_v58 = vld [vmem:[#allocation22] sm:$0xff]  ;;  %v1006_v59 = vld [vmem:[#allocation22 + $0x8] sm:$0xff]  ;;  %vm1205_vm5 = vcmask 1041409  }
 0x19a   : > { %1819 = vmatprep.subr.bf16.mxu1 %v2627_v23  ;;  %1835 = vmatprep.subr.bf16.mxu0 %v2627_v23  ;;  %v2100_v54 = vld [vmem:[#allocation11 + $0x8] sm:$0xff]   ;;  %v1897_v61 = vpack.c.bf16 %v1006_v59, %v1005_v58  ;;  %v1008_v63 = vld [vmem:[#allocation22 + $0x18] sm:$0xff]  ;;  %v3188_v33 = vld [vmem:[#allocation23] sm:$0xf]  ;;  %s1754_s20 = sshll.u32 %s3101_s26, 1  ;;  %s1779_s29 = sshll.u32 %s3324_s14, 5 }
 0x19b   : > { %860 = vadd.xlane.f32.xlu0 %v859_v5  ;;  %1821 = vmatprep.mubr.msk.bf16.mxu1 %vm2628_vm2, %v2627_v23  ;;  %v889_v43 = vrot.slane %v661_v39, %v3153_v37  ;;  %v897_v52 = vrot.slane %v662_v41, %v3153_v37  ;;  %v1007_v62 = vld [vmem:[#allocation22 + $0x10] sm:$0xff]  ;;  %s658_s21 = scalar_lea.vmem [#allocation25], %s1754_s20  ;;  %vm1510_vm6 = vcmask 254976   ;;  %s3339_s18 = sld [smem:[#allocation42_spill]] }
 0x19c   : > { %1837 = vmatprep.mubr.msk.bf16.mxu0 %vm2628_vm2, %v2627_v23  ;;  %s1526_s1 = sshll.u32 %s658_s21, 4  ;;  %s1513_s28 = scalar_lea.sflag [#allocation4], %s3101_s26  ;;  %s3230_s1 = int_to_ptr.vmem [resolvable:$true] %s1526_s1 }
 0x19d   : > { %1820 = vmatpush3.bf16.msra.mxu1 %v2097_v24  ;;  %1836 = vmatpush3.bf16.msra.mxu0 %v2098_v25  ;;  %s2513_s3 = scalar_lea.vmem %s3230_s1, 32  ;;  %p3340_p11 = scmp.ne.s32.totalorder %s3316_s27, 0 }
 0x19e   : > { %1825 = vmatprep.subr.bf16.mxu1 %v2627_v23  ;;  %1849 = vmatprep.subr.bf16.mxu0 %v2627_v23  ;;  %p2514_p6 = scmp.ne.s32.totalorder %s3230_s1, %s2513_s3  ;;  %s2630_s0 = smov [#allocation25]  }
 0x19f   : > { %s2517_s14 = sshll.u32 %s2630_s0, 4  ;;  %s2518_s14 = int_to_ptr.vmem [resolvable:$false] %s2517_s14 }
 0x1a0   : > { %p2515_p12 = pnand %p2514_p6, %p3340_p11  ;;  %s2519_s20 = scalar_lea.vmem %s2518_s14, 64 }
 0x1a1   : > { %s3228_s17 = scalar_lea.hbm %s3339_s18, %s1779_s29  ;;  %p2520_p5 = scmp.lt.s32.totalorder %s3230_s1, %s2518_s14 }
 0x1a2   : > { %p2516_p0 = pneg %p2515_p12  ;;  %p2521_p9 = scmp.lt.s32.totalorder %s2519_s20, %s2513_s3 }
 0x1a4   : > { %p2522_p7 = por %p2521_p9, %p2520_p5 }
 0x1a6   : > { %p2523_p10 = pnand %p2522_p7, %p2516_p0 }
 0x224   : > { %v667_v6 = vpop.xlane.xlu0 %666 }
 0x225   : > { %v864_v7 = vpop.xlane.xlu1 %863  ;;  %v669_v8 = vmul.f32 0.03125, %v667_v6 }
 0x226   : > { %v866_v9 = vmul.f32 0.03125, %v864_v7 }
 0x227   : > { %v670_v10 = vsub.f32 %v663_v0, %v669_v8  ;;  %v1901_v0 = vpack.c.bf16 %v1008_v63, %v1007_v62 }
 0x228   : > { %v868_v11 = vsub.f32 %v858_v1, %v866_v9  ;;  %v861_v12 = vpop.xlane.xlu0 %860  ;;  %v686_v9 = vld [vmem:[#allocation14] sm:$0x1] }
 0x229   : > { %v865_v13 = vmul.f32 0.03125, %v861_v12  ;;  %v671_v14 = vmul.f32 %v670_v10, %v670_v10 }
 0x22a   : > { %v870_v15 = vmul.f32 %v868_v11, %v868_v11 }
 0x22b   : > { %v867_v16 = vsub.f32 %v857_v2, %v865_v13  ;;  %v672_v17 = vsel %vm664_vm0, %v671_v14, 0.0 }
 0x22c   : > { %673 = vadd.xlane.f32.xlu1 %v672_v17  ;;  %v874_v18 = vsel %vm699_vm1, %v870_v15, 0.0 }
 0x22d   : > { %v869_v19 = vmul.f32 %v867_v16, %v867_v16 }
 0x22f   : > { %v871_v20 = vsel %vm699_vm1, %v869_v19, 0.0 }
 0x230   : > { %875 = vadd.xlane.f32.xlu1 %v874_v18  ;;  %872 = vadd.xlane.f32.xlu0 %v871_v20 }
 0x2b9   : > { %v674_v26 = vpop.xlane.xlu1 %673 }
 0x2ba   : > { %v675_v27 = vmul.f32 0.03125, %v674_v26 }
 0x2bc   : > { %v676_v28 = vadd.f32 1e-05, %v675_v27 }
 0x2bd   : > { %v876_v29 = vpop.xlane.xlu1 %875  ;;  %v873_v30 = vpop.xlane.xlu0 %872 }
 0x2be   : > { %2103 = vrsqrt.f32 %v676_v28  ;;  %v878_v31 = vmul.f32 0.03125, %v876_v29  ;;  %v877_v32 = vmul.f32 0.03125, %v873_v30 }
 0x2c0   : > { %v880_v34 = vadd.f32 1e-05, %v878_v31  ;;  %v879_v35 = vadd.f32 1e-05, %v877_v32 }
 0x2c2   : > { %2105 = vrsqrt.f32 %v880_v34 }
 0x2c3   : > { %2107 = vrsqrt.f32 %v879_v35 }
 0x2c8   : > { %v2104_v38 = vpop.eup %2103 }
 0x2c9   : > { %v678_v40 = vmul.f32 %v2104_v38, %v670_v10  ;;  %v747_v10 = vld [vmem:[#allocation16] sm:$0x1] }
 0x2cb   : > { %v679_v42 = vmul.f32 %v678_v40, %v661_v39 }
 0x2cc   : > { %v2106_v44 = vpop.eup %2105 }
 0x2cd   : > { %v2108_v45 = vpop.eup %2107  ;;  %v884_v46 = vmul.f32 %v2106_v44, %v868_v11  ;;  %v680_v47 = vadd.f32 %v679_v42, %v662_v41 }
 0x2ce   : > { %v883_v48 = vmul.f32 %v2108_v45, %v867_v16 }
 0x2cf   : > { %v681_v50 = vpack.c.bf16 %v680_v47, %v680_v47  ;;  %v892_v51 = vmul.f32 %v889_v43, %v884_v46 }
 0x2d0   : > { %v891_v53 = vmul.f32 %v889_v43, %v883_v48 }
 0x2d1   : > { %1822 = vmatmul.mubr.msk.bf16.vlgmr.msra.gmra.mrb[0].mxu1 %vm699_vm1, %v681_v50  ;;  %1838 = vmatmul.mubr.msk.bf16.vlgmr.msra.gmra.mrb[0].mxu0 %vm699_vm1, %v681_v50  ;;  %v900_v56 = vadd.f32 %v897_v52, %v892_v51 }
 0x2d2   : > { %1826 = vmatpush3.bf16.msra.mxu1 %v2099_v49  ;;  %1850 = vmatpush3.bf16.msra.mxu0 %v2096_v22  ;;  %v899_v55 = vadd.f32 %v897_v52, %v891_v53  ;;  %v906_v22 = vrot.slane %v747_v10, %v3153_v37 }
 0x2d3   : > { %1827 = vmatprep.subr.bf16.mxu1 %v2627_v23  ;;  %1851 = vmatprep.subr.bf16.mxu0 %v2627_v23 }
 0x2d4   : > { %1829 = vmatprep.mubr.msk.bf16.mxu1 %vm2628_vm2, %v2627_v23  ;;  %1853 = vmatprep.mubr.msk.bf16.mxu0 %vm2628_vm2, %v2627_v23  ;;  %v901_v57 = vpack.c.bf16 %v900_v56, %v899_v55 }
 0x2d6   : > { %1828 = vmatpush3.bf16.msra.mxu1 %v2100_v54  ;;  %1852 = vmatpush3.bf16.msra.mxu0 %v2098_v25 }
 0x2d7   : > { %1841 = vmatprep.subr.bf16.mxu1 %v2627_v23  ;;  %1905 = vmatprep.subr.bf16.mxu0 %v2629_v60 }
 0x2d9   : > { %1830 = vmatmul.mubr.msk.bf16.vlgmr.msra.gmra.mrb[4].mxu1 %vm699_vm1, %v681_v50  ;;  %1854 = vmatmul.mubr.msk.bf16.vlgmr.msra.gmra.mrb[4].mxu0 %vm699_vm1, %v901_v57 }
 0x2da   : > { %1842 = vmatpush3.bf16.msra.mxu1 %v2099_v49  ;;  %1845 = vmatprep.mubr.msk.bf16.mxu1 %vm2628_vm2, %v2627_v23 }
 0x2db   : > { %1843 = vmatprep.subr.bf16.mxu1 %v2627_v23  ;;  %1876 = vmatprep.mubr.msk.f32.mxu0 %vm2628_vm2, %v2627_v23 }
 0x2dc   : > { %1907 = vmatpush3.bf16.msra.mxu0 %v1897_v61 }
 0x2dd   : > { %1908 = vmatprep.subr.bf16.mxu0 %v2629_v60 }
 0x2de   : > { %1844 = vmatpush3.bf16.msra.mxu1 %v2100_v54 }
 0x2df   : > { %1898 = vmatprep.subr.bf16.mxu1 %v1897_v61 }
 0x2e0   : > { %1910 = vmatpush3.bf16.msra.mxu0 %v1901_v0 }
 0x2e1   : > { %1846 = vmatmul.mubr.msk.bf16.vlgmr.msra.gmra.mrb[8].mxu1 %vm699_vm1, %v901_v57  ;;  %1889 = vmatprep.subr.bf16.mxu0 %v2627_v23 }
 0x2e2   : > { %1900 = vmatpush3.bf16.msra.mxu1 %v1897_v61 }
 0x2e3   : > { %1902 = vmatprep.subr.bf16.mxu1 %v1901_v0 }
 0x2e6   : > { %1904 = vmatpush3.bf16.msra.mxu1 %v1901_v0 }
 0x2e7   : > { %1879 = vmatprep.subr.msk.mxu1 %vm1256_vm3, %v3188_v33 }
 0x3a4   : > { %v737_v1 = vpop.f32.mrb[0].mxu1  ;;  %v3175_v2 = vpop.f32.mrb[0].mxu0 }
 0x3a5   : > { %v1823_v3 = vpop.f32.mrb[1].mxu1  ;;  %v1839_v4 = vpop.f32.mrb[1].mxu0  ;;  %v738_v13 = vadd.f32 %v737_v1, %v686_v9 }
 0x3a6   : > { %v740_v5 = vpop.f32.mrb[2].mxu1  ;;  %v854_v6 = vpop.f32.mrb[2].mxu0 }
 0x3a7   : > { %v1824_v7 = vpop.f32.mrb[3].mxu1  ;;  %v1840_v8 = vpop.f32.mrb[3].mxu0  ;;  %v1002_v25 = vrot.slane %v738_v13, %v3153_v37 }
 0x3ac   : > { %v794_v11 = vpop.f32.mrb[4].mxu1  ;;  %v3177_v12 = vpop.f32.mrb[4].mxu0 }
 0x3ad   : > { %v795_v14 = vadd.f32 %v794_v11, %v747_v10  ;;  %v1831_v15 = vpop.f32.mrb[5].mxu1  ;;  %v1855_v16 = vpop.f32.mrb[5].mxu0 }
 0x3ae   : > { %v797_v17 = vpop.f32.mrb[6].mxu1  ;;  %v3179_v18 = vpop.f32.mrb[6].mxu0 }
 0x3af   : > { %v1092_v19 = vmul.f32 %v795_v14, %v738_v13  ;;  %v1832_v20 = vpop.f32.mrb[7].mxu1  ;;  %v1856_v21 = vpop.f32.mrb[7].mxu0 }
 0x3b1   : > { %1877 = vmatmul.mubr.msk.f32.vlgmr.msra.gmra.mrb[8].mxu0 %vm699_vm1, %v1092_v19 }
 0x3b2   : > { %1893 = vmatprep.mubr.msk.bf16.mxu0 %vm2628_vm2, %v2627_v23 }
 0x3b4   : > { %v945_v24 = vpop.f32.mrb[8].mxu1 }
 0x3b5   : > { %v946_v26 = vadd.f32 %v945_v24, %v906_v22  ;;  %v1847_v27 = vpop.f32.mrb[9].mxu1 }
 0x3b6   : > { %v948_v28 = vpop.f32.mrb[10].mxu1 }
 0x3b7   : > { %v1003_v29 = vmul.f32 %v1002_v25, %v946_v26  ;;  %v949_v30 = vadd.f32 %v948_v28, %v906_v22  ;;  %v1848_v31 = vpop.f32.mrb[11].mxu1 }
 0x3b9   : > { %v1004_v32 = vmul.f32 %v1002_v25, %v949_v30  ;;  %1865 = vmatprep.mubr.msk.f32.mxu1 %vm699_vm1, %v1003_v29 }
 0x3bb   : > { %1866 = vmatmul.mubr.msk.f32.vlgmr.msra.gmra.mrb[12].mxu1 %vm699_vm1, %v1004_v32 }
 0x3bc   : > { %1880 = vmatpush3.msk.msra.mxu1 %vm1256_vm3, %v3188_v33 }
 0x3bd   : > { %1884 = vmatprep.subr.mxu1 %v2627_v23 }
 0x484   : > { %v1162_v34 = vpop.f32.mrb[8].mxu0 }
 0x485   : > { %v1878_v35 = vpop.f32.mrb[9].mxu0  ;;  %v1166_v49 = vmul.f32 0.35355338, %v1162_v34 }
 0x487   : > { %v1185_v54 = vrot.slane %v1166_v49, %v3153_v37 }
 0x48e   : > { %v1867_v36 = vpop.f32.mrb[12].mxu1 }
 0x48f   : > { %v1091_v38 = vmul.f32 0.35355338, %v1867_v36  ;;  %v1081_v39 = vpop.f32.mrb[13].mxu1 }
 0x490   : > { %v1090_v40 = vmul.f32 0.35355338, %v1081_v39 }
 0x491   : > { %v1175_v41 = vsel %vm1167_vm4, %v1091_v38, -inf }
 0x492   : > { %v1176_v42 = vrot.slane %v1175_v41, 4  ;;  %v1168_v43 = vsel %vm1167_vm4, %v1090_v40, -inf }
 0x493   : > { %v1169_v44 = vrot.slane %v1168_v43, 4 }
 0x494   : > { %v1177_v45 = vmax.f32 %v1175_v41, %v1176_v42  ;;  %v2102_v41 = vld [vmem:[#allocation19 + $0x8] sm:$0xff]   ;;  %v804_v42 = vld [vmem:[#allocation17] sm:$0x1] }
 0x495   : > { %v1170_v46 = vmax.f32 %v1168_v43, %v1169_v44  ;;  %v956_v43 = vrot.slane %v804_v42, %v3153_v37  ;;  %v852_v44 = vadd.f32 %v3175_v2, %v804_v42 }
 0x496   : > { %v1178_v47 = vrot.slane %v1177_v45, 2 }
 0x497   : > { %v1171_v48 = vrot.slane %v1170_v46, 2 }
 0x498   : > { %v1179_v50 = vmax.f32 %v1177_v45, %v1178_v47  ;;  %v996_v45 = vadd.f32 %v3179_v18, %v956_v43 }
 0x499   : > { %v1172_v51 = vmax.f32 %v1170_v46, %v1171_v48 }
 0x49a   : > { %v1180_v52 = vrot.slane %v1179_v50, 1 }
 0x49b   : > { %v1173_v53 = vrot.slane %v1172_v51, 1 }
 0x49c   : > { %v1181_v55 = vmax.f32 %v1179_v50, %v1180_v52 }
 0x49d   : > { %v1174_v56 = vmax.f32 %v1172_v51, %v1173_v53  ;;  %v1427_v51 = vrot.slane %v852_v44, %v3153_v37 }
 0x49e   : > { %v1187_v57 = vmax.f32 %v1181_v55, %v1185_v54 }
 0x49f   : > { %v1186_v58 = vmax.f32 %v1174_v56, %v1185_v54 }
 0x4a0   : > { %v1195_v59 = vrot.slane %v1187_v57, %v3153_v37  ;;  %v1204_v60 = vrot.slane %v1187_v57, 7 }
 0x4a1   : > { %v1191_v61 = vrot.slane %v1186_v58, %v3153_v37 }
 0x4a2   : > { %v1197_v62 = vsub.f32 %v1091_v38, %v1195_v59  ;;  %v1206_v63 = vsel %vm1205_vm5, %v1204_v60, %v1186_v58 }
 0x4a3   : > { %v1196_v0 = vsub.f32 %v1090_v40, %v1191_v61  ;;  %v1208_v1 = vsub.f32 %v1185_v54, %v1206_v63  ;;  %v2101_v40 = vld [vmem:[#allocation19] sm:$0xff]  }
 0x4a4   : > { %v1200_v3 = vmul.f32 1.442695, %v1197_v62  ;;  %1890 = vmatpush3.bf16.msra.mxu0 %v2101_v40 }
 0x4a5   : > { %v1198_v4 = vmul.f32 1.442695, %v1196_v0  ;;  %v1209_v5 = vmul.f32 1.442695, %v1208_v1  ;;  %1891 = vmatprep.subr.bf16.mxu0 %v2627_v23 }
 0x4a6   : > { %2109 = vpow2.f32 %v1200_v3 }
 0x4a7   : > { %2111 = vpow2.f32 %v1198_v4 }
 0x4a8   : > { %2113 = vpow2.f32 %v1209_v5  ;;  %1892 = vmatpush3.bf16.msra.mxu0 %v2102_v41 }
 0x4b0   : > { %v2110_v6 = vpop.eup %2109 }
 0x4b1   : > { %v2112_v7 = vpop.eup %2111  ;;  %v1218_v8 = vsel %vm1167_vm4, %v2110_v6, 0.0 }
 0x4b2   : > { %v1219_v9 = vrot.slane %v1218_v8, 4  ;;  %v1211_v10 = vsel %vm1167_vm4, %v2112_v7, 0.0  ;;  %v2114_v19 = vpop.eup %2113 }
 0x4b3   : > { %v1212_v11 = vrot.slane %v1211_v10, 4  ;;  %v1226_v25 = vrot.slane %v2114_v19, 1 }
 0x4b4   : > { %v1220_v13 = vadd.f32 %v1219_v9, %v1218_v8 }
 0x4b5   : > { %v1213_v14 = vadd.f32 %v1212_v11, %v1211_v10  ;;  %v1774_v10 = vld [vmem:[#allocation20] ss:$0 sm:$0xff] }
 0x4b6   : > { %v1221_v15 = vrot.slane %v1220_v13, 2 }
 0x4b7   : > { %v1214_v16 = vrot.slane %v1213_v14, 2 }
 0x4b8   : > { %v1222_v17 = vadd.f32 %v1221_v15, %v1220_v13 }
 0x4b9   : > { %v1215_v20 = vadd.f32 %v1214_v16, %v1213_v14 }
 0x4ba   : > { %v1223_v21 = vrot.slane %v1222_v17, 1 }
 0x4bb   : > { %v1216_v22 = vrot.slane %v1215_v20, 1 }
 0x4bc   : > { %v1224_v24 = vadd.f32 %v1223_v21, %v1222_v17 }
 0x4bd   : > { %v1217_v26 = vadd.f32 %v1216_v22, %v1215_v20 }
 0x4be   : > { %v1230_v27 = vadd.f32 %v1226_v25, %v1224_v24 }
 0x4bf   : > { %v1229_v28 = vadd.f32 %v2114_v19, %v1217_v26 }
 0x4c0   : > { %2115 = vrcp.f32 %v1230_v27 }
 0x4c1   : > { %2117 = vrcp.f32 %v1229_v28 }
 0x4ca   : > { %v2116_v29 = vpop.eup %2115 }
 0x4cb   : > { %v2118_v30 = vpop.eup %2117  ;;  %v1240_v31 = vrot.slane %v2116_v29, %v3153_v37  ;;  %v1245_v32 = vrot.slane %v2116_v29, 7 }
 0x4cc   : > { %v1236_v34 = vrot.slane %v2118_v30, %v3153_v37 }
 0x4cd   : > { %v1242_v35 = vmul.f32 %v2110_v6, %v1240_v31  ;;  %v1246_v36 = vsel %vm1205_vm5, %v1245_v32, %v2118_v30 }
 0x4ce   : > { %v1241_v38 = vmul.f32 %v2112_v7, %v1236_v34  ;;  %v1248_v39 = vmul.f32 %v2114_v19, %v1246_v36 }
 0x4d0   : > { %1881 = vmatprep.mubr.msk.f32.mxu1 %vm1167_vm4, %v1241_v38 }
 0x4d1   : > { %1882 = vmatmul.mubr.msk.f32.vlgmr.msra.gmra.mrb[14].mxu1 %vm1167_vm4, %v1242_v35 }
 0x4d2   : > { %1885 = vmatpush3.msk.msra.mxu1 %vm1256_vm3, %v3188_v33  ;;  %1886 = vmatprep.mubr.msk.f32.mxu1 %vm2628_vm2, %v2627_v23  ;;  %v993_v33 = vadd.f32 %v3177_v12, %v956_v43 }
 0x4d5   : > { %1887 = vmatmul.mubr.msk.f32.vlgmr.msra.gmra.mrb[16].mxu1 %vm1167_vm4, %v1248_v39 }
 0x5a4   : > { %v1883_v46 = vpop.f32.mrb[14].mxu1 }
 0x5a5   : > { %v1409_v47 = vmul.f32 %v1883_v46, %v996_v45  ;;  %v1326_v48 = vpop.f32.mrb[15].mxu1 }
 0x5a6   : > { %v1408_v49 = vmul.f32 %v1326_v48, %v993_v33 }
 0x5a7   : > { %v1417_v50 = vsel %vm699_vm1, %v1409_v47, 0.0 }
 0x5a8   : > { %v1418_v23 = vrot.slane %v1417_v50, 4  ;;  %v1410_v52 = vsel %vm699_vm1, %v1408_v49, 0.0  ;;  %v1404_v53 = vpop.f32.mrb[16].mxu1 }
 0x5a9   : > { %v1411_v54 = vrot.slane %v1410_v52, 4  ;;  %v1428_v55 = vmul.f32 %v1427_v51, %v1404_v53  ;;  %v1888_v56 = vpop.f32.mrb[17].mxu1 }
 0x5aa   : > { %v1419_v2 = vadd.f32 %v1418_v23, %v1417_v50 }
 0x5ab   : > { %v1412_v57 = vadd.f32 %v1411_v54, %v1410_v52  ;;  %v1430_v63 = vrot.slane %v1428_v55, 1 }
 0x5ac   : > { %v1420_v18 = vrot.slane %v1419_v2, 2 }
 0x5ad   : > { %v1413_v58 = vrot.slane %v1412_v57, 2 }
 0x5ae   : > { %v1421_v12 = vadd.f32 %v1420_v18, %v1419_v2 }
 0x5af   : > { %v1414_v59 = vadd.f32 %v1413_v58, %v1412_v57 }
 0x5b0   : > { %v1422_v60 = vrot.slane %v1421_v12, 1 }
 0x5b1   : > { %v1415_v61 = vrot.slane %v1414_v59, 1 }
 0x5b2   : > { %v1423_v62 = vadd.f32 %v1422_v60, %v1421_v12 }
 0x5b3   : > { %v1416_v37 = vadd.f32 %v1415_v61, %v1414_v59 }
 0x5b4   : > { %v1434_v0 = vadd.f32 %v1430_v63, %v1423_v62 }
 0x5b5   : > { %v1433_v1 = vadd.f32 %v1428_v55, %v1416_v37 }
 0x5b6   : > { %v1436_v3 = vpack.c.bf16 %v1434_v0, %v1434_v0 }
 0x5b7   : > { %v1435_v4 = vpack.c.bf16 %v1433_v1, %v1433_v1 }
 0x5b8   : > { %v1451_v5 = vunpack.c.l.b16 %v1436_v3 }
 0x5b9   : > { %v1450_v6 = vunpack.c.l.b16 %v1435_v4 }
 0x5ba   : > { %v1452_v7 = vrot.slane %v1451_v5, 7 }
 0x5bc   : > { %v1453_v8 = vsel %vm1205_vm5, %v1452_v7, %v1450_v6 }
 0x5bd   : > { %v1454_v9 = vpack.c.b16 %v1453_v8, %v1453_v8 }
 0x5bf   : > { %1894 = vmatmul.mubr.msk.bf16.vlgmr.msra.gmra.mrb[12].mxu0 %vm699_vm1, %v1454_v9 }
 0x692   : > { %v1504_v11 = vpop.f32.mrb[12].mxu0 }
 0x693   : > { %v1505_v13 = vadd.f32 %v1774_v10, %v1504_v11  ;;  %v1895_v14 = vpop.f32.mrb[13].mxu0 }
 0x694   : > { %v1507_v15 = vpop.f32.mrb[14].mxu0 }
 0x695   : > { %v1896_v16 = vpop.f32.mrb[15].mxu0  ;;  %1511 = vst.msk [vmem:[%s658_s21] sm:$0x3] %vm1510_vm6, %v1505_v13 }
 0x696   : > { %2526 = shalt.err (!%p2523_p10)
}
 0x697   : > { %s2527_s26 = scalar_lea.hbm %s3228_s17, 32  ;;  %s2531_s30 = scalar_lea.hbm %s3339_s18, 64 }
 0x698   : > { %p2528_p4 = scmp.ne.s32.totalorder %s3228_s17, %s2527_s26  ;;  %p2532_p3 = scmp.lt.u32.totalorder %s3228_s17, %s3339_s18 }
 0x699   : > { %p2533_p2 = scmp.lt.u32.totalorder %s2531_s30, %s2527_s26  ;;  %p2535_p6 = scmp.lt.u32.totalorder %s2527_s26, %s3228_s17 }
 0x69a   : > { %p2529_p13 = pnand %p2528_p4, %p3340_p11 }
 0x69b   : > { %p2534_p8 = por %p2533_p2, %p2532_p3 }
 0x69c   : > { %p2530_p1 = pneg %p2529_p13 }
 0x69d   : > { %p2536_p12 = por %p2535_p6, %p2534_p8 }
 0x69f   : > { %p2537_p0 = pnand %p2536_p12, %p2530_p1 }
 0x6a1   : > { %2540 = shalt.err (!%p2537_p0)
}
 0x6a2   : > { %1965 = dma.vmem_to_hbm [thread:$0]  (%p3340_p11), %s3230_s1, 32, %s3228_s17, %s1513_s28  }
 0x6a3 PF: > { %s3341_s3 = sld [smem:[#allocation35_spill]]  ;;  %p3342_p5 = scmp.ne.s32.totalorder %s3317_s24, 0 }
 0x6a4   : > { %p3343_p9 = scmp.ge.s32.totalorder %s2607_s16, 2 }
 0x6a6   : > { %p2012_p7 = pnand %p3343_p9, %p3342_p5 }
 0x6a9   : > { %s1538_s14 = sand.u32 1, %s3341_s3  }
 0x6aa   : > { %s1539_s20 = scalar_lea.sflag [#allocation4], %s1538_s14 }
 0x6ab   : > { %2590 = dma.done.wait (!%p2012_p7), %s1539_s20, 32  }
 0x6ac   : > { %2592 = vsyncadd (!%p2012_p7), %s1539_s20, 4294967264  ;;  %s3344_s29 = sld [smem:[#allocation36_spill]]  ;;  %p34_p10 = scmp.ge.s32.totalorder %s3025_s23, 4  }
 0x6ad   : > { %s3345_s30 = smov %s2603_s15  ;;  %s3346_s15 = smov %s3037_s25 }
 0x6ae   : > { %s3347_s16 = smov %s3025_s23  ;;  %36 = sbr.rel (!%p34_p10) target bundleno = 17 (0x11), region = 173 }
 0x6b5   :  { %1544 = vsyncpa [#allocation3], 1 }
 0x6b6   :  { %1546 = vsyncpa [#allocation3 + $0x1], 1 }
 0x6b7   :  { %1547 = vsyncpa [#allocation6], 1 }
 0x6b8   :  { %1548 = vsyncpa [#allocation9], 1 }
 0x6b9   :  { %1549 = vsyncpa [#allocation12], 1 }
 0x6ba   :  { %1550 = vsyncpa [#allocation15], 1 }
 0x6bb   :  { %1551 = vsyncpa [#allocation18], 1 }
 0x6bc   :  { %1552 = vsyncpa [#allocation21], 1 }
 0x6bd   :  { %1553 = vsyncpa [#allocation24], 1 }
 0x6be   :  { %1554 = vsyncpa [#allocation4], 1 }
 0x6bf   :  { %1556 = vsyncpa [#allocation4 + $0x1], 1 }

</bundles_post_ra>
